<compile_context>
chip_gen: v7x
topology: tpu7x:2x2x1
jax: 0.10.0
libtpu: 0.0.40
codegen_flags: <defaults>
</compile_context>

<pallas_src>
import jax
import jax.numpy as jnp
from jax.experimental import pallas as pl
from jax.experimental.pallas import tpu as pltpu

BERT_DIM = 768       # bert_output_size
NUM_LABELS = 26      # Linear(768 * 2, 26)
LABEL_PAD = 128      # lane-dense padded label dimension (multiple of 128)


# --------------------------------------------------------------------------- #
# Pallas kernel: BERT pooler (stand-in) + concat-free, fused classification    #
# --------------------------------------------------------------------------- #
def _pooler_head_kernel(pad_ref, cls_ref, wpool_ref, bpool_ref,
                        wfc_ref, bfc_ref, out_ref):
    # BERT pooler (stand-in weights): pooled = tanh(h_cls @ W_pool + b_pool)
    pooled = jnp.tanh(
        jnp.dot(cls_ref[...], wpool_ref[...],
                preferred_element_type=jnp.float32) + bpool_ref[...])

    # lin(cat([pad_outputs, cls_outputs], dim=1)) as ONE fused matmul:
    # features (bb, 1536) @ stacked W (1536, 128) + b, lane-dense f32 store.
    feats = jnp.concatenate([pad_ref[...], pooled.astype(jnp.bfloat16)], axis=-1)
    out_ref[...] = (jnp.dot(feats, wfc_ref[...],
                            preferred_element_type=jnp.float32) + bfc_ref[...])


def pooler_and_head(pad_h, cls_h, w_pool, b_pool, w_fc, b_fc, *, block_b=256):
    """pad_h, cls_h: (B, 768) bf16  ->  logits (B, NUM_LABELS) f32."""
    B, D = pad_h.shape
    # Batch tile: big enough to fill the 128/256 MXU rows; small B falls back
    # to a single full-batch block (block == full dim satisfies the (8,128)
    # rule).  For B > block_b there are >= 2 tiles, so the "parallel" grid axis
    # can shard across v7x's two TensorCores.
    bb = min(block_b, B)
    nb = pl.cdiv(B, bb)

    out_padded = pl.pallas_call(
        _pooler_head_kernel,
        out_shape=jax.ShapeDtypeStruct((B, LABEL_PAD), jnp.float32),
        grid_spec=pltpu.PrefetchScalarGridSpec(
            num_scalar_prefetch=0,
            grid=(nb,),
            in_specs=[
                pl.BlockSpec((bb, D), lambda i: (i, 0)),              # pad (bf16)
                pl.BlockSpec((bb, D), lambda i: (i, 0)),              # cls (bf16)
                pl.BlockSpec((D, D), lambda i: (0, 0)),               # W_pool (bf16)
                pl.BlockSpec((1, D), lambda i: (0, 0)),               # b_pool (f32)
                pl.BlockSpec((2 * D, LABEL_PAD), lambda i: (0, 0)),   # W_fc (bf16)
                pl.BlockSpec((1, LABEL_PAD), lambda i: (0, 0)),       # b_fc (f32)
            ],
            out_specs=pl.BlockSpec((bb, LABEL_PAD), lambda i: (i, 0)),
        ),
        compiler_params=pltpu.CompilerParams(
            dimension_semantics=("parallel",)),                        # batch tiles independent
    )(pad_h, cls_h, w_pool, b_pool, w_fc, b_fc)

    return out_padded[:, :NUM_LABELS]


# --------------------------------------------------------------------------- #
# Parameters + full forward                                                    #
# --------------------------------------------------------------------------- #
def init_params(key, vocab_size, max_seq):
    ks = jax.random.split(key, 7)
    D = BERT_DIM

    # Stand-in BERT embedding tables (deterministic).
    word_emb = 0.02 * jax.random.normal(ks[0], (vocab_size, D), jnp.float32)
    seg_emb = 0.02 * jax.random.normal(ks[1], (2, D), jnp.float32)
    pos_emb = 0.02 * jax.random.normal(ks[2], (max_seq, D), jnp.float32)

    # Stand-in BERT pooler: Dense(768 -> 768) + tanh (tanh applied in-kernel).
    pb = 1.0 / (D ** 0.5)
    w_pool = jax.random.uniform(ks[3], (D, D), jnp.float32, -pb, pb)
    b_pool = jax.random.uniform(ks[4], (D,), jnp.float32, -pb, pb)

    # Classification head: Linear(2 * 768, 26) with PyTorch default init bound.
    fb = 1.0 / ((2 * D) ** 0.5)
    w_fc = jax.random.uniform(ks[5], (NUM_LABELS, 2 * D), jnp.float32, -fb, fb)
    b_fc = jax.random.uniform(ks[6], (NUM_LABELS,), jnp.float32, -fb, fb)

    # x @ W^T form: the pad/pooled halves are already stacked along K so
    # torch.cat([pad, pooled]) @ W^T == [pad | pooled] @ W_fc_t, and the label
    # dim is zero-padded to 128 so the kernel's output store is lane-dense.
    w_fc_t = jnp.transpose(w_fc)                                        # (1536, 26)
    w_fc_pad = jnp.zeros((2 * D, LABEL_PAD), jnp.bfloat16).at[:, :NUM_LABELS].set(
        w_fc_t.astype(jnp.bfloat16))
    b_fc_pad = jnp.zeros((1, LABEL_PAD), jnp.float32).at[0, :NUM_LABELS].set(b_fc)

    return {
        "word_emb": word_emb,
        "seg_emb": seg_emb,
        "pos_emb": pos_emb,
        "w_pool": w_pool.astype(jnp.bfloat16),   # bf16 MXU weight (resident block)
        "b_pool": b_pool.reshape(1, D),          # f32 bias
        "w_fc": w_fc_pad,                        # (1536, 128) bf16, zero-padded labels
        "b_fc": b_fc_pad,                        # (1, 128) f32, zero-padded labels
        # f32 originals for the pure-JAX tolerance reference.
        "ref": {"w_pool": w_pool, "b_pool": b_pool, "w_fc": w_fc, "b_fc": b_fc},
    }


def _bert_standin_two_tokens(params, input_ids, segment_ids):
    """Stand-in for the injected BERT encoder.  Returns only the two hidden
    vectors the head consumes, in f32: (h[:, 0, :], h[:, S-1, :])."""
    S = input_ids.shape[1]
    sel = jnp.array([0, S - 1], dtype=jnp.int32)
    h = (params["word_emb"][input_ids[:, sel]]
         + params["seg_emb"][segment_ids[:, sel]]
         + params["pos_emb"][sel][None, :, :])                          # (B, 2, 768)
    return h[:, 0, :], h[:, 1, :]


def classifier_pad_forward(params, input_ids, segment_ids, input_mask):
    # TODO(synk): the constructor-injected full BERT encoder (which consumes
    # input_mask inside attention) has no clean Pallas equivalent here; a
    # deterministic embedding-table stand-in produces the hidden states and
    # input_mask is unused.  The reference model reads hiddens[-1][:, -1, :]
    # un-masked, so no mask multiply is applied to the hidden states.
    del input_mask
    cls_h, pad_h = _bert_standin_two_tokens(params, input_ids, segment_ids)
    return pooler_and_head(pad_h.astype(jnp.bfloat16), cls_h.astype(jnp.bfloat16),
                           params["w_pool"], params["b_pool"],
                           params["w_fc"], params["b_fc"])


def reference_forward(params, input_ids, segment_ids, input_mask):
    """Pure-JAX f32 reference of the same math (pooler + cat + Linear)."""
    del input_mask
    cls_h, pad_h = _bert_standin_two_tokens(params, input_ids, segment_ids)
    ref = params["ref"]
    pooled = jnp.tanh(cls_h @ ref["w_pool"] + ref["b_pool"])
    outs = jnp.concatenate([pad_h, pooled], axis=1)                     # (B, 1536)
    return outs @ ref["w_fc"].T + ref["b_fc"]


if __name__ == "__main__":
    key = jax.random.PRNGKey(0)
    k_ids, k_params = jax.random.split(key)

    B, S, VOCAB = 2, 8, 30
    input_ids = jax.random.randint(k_ids, (B, S), 0, VOCAB)
    segment_ids = jnp.zeros((B, S), jnp.int32)
    input_mask = jnp.ones((B, S), jnp.int32)

    params = init_params(k_params, VOCAB, max_seq=S)
    pred = classifier_pad_forward(params, input_ids, segment_ids, input_mask)
    pred = jax.block_until_ready(pred)

    assert pred.shape == (B, NUM_LABELS), pred.shape
    assert bool(jnp.all(jnp.isfinite(pred)))

    # Tolerance check against the pure-JAX f32 reference (bf16 MXU numerics).
    ref = reference_forward(params, input_ids, segment_ids, input_mask)
    max_err = float(jnp.max(jnp.abs(pred - ref)))
    assert max_err < 1e-2, f"max |pred - ref| = {max_err}"

    print("KERNEL_OK")
</pallas_src>

<mosaic_0001>
module attributes {stable_mosaic.version = 11 : i64} {
  func.func @_pooler_head_kernel(%arg0: i32, %arg1: memref<2x768xbf16, #tpu.memory_space<vmem>>, %arg2: memref<2x768xbf16, #tpu.memory_space<vmem>>, %arg3: memref<768x768xbf16, #tpu.memory_space<vmem>>, %arg4: memref<1x768xf32, #tpu.memory_space<vmem>>, %arg5: memref<1536x128xbf16, #tpu.memory_space<vmem>>, %arg6: memref<1x128xf32, #tpu.memory_space<vmem>>, %arg7: memref<2x128xf32, #tpu.memory_space<vmem>>) attributes {dimension_semantics = [#tpu.dimension_semantics<parallel>], iteration_bounds = array<i64: 1>, scalar_prefetch = 0 : i64, scratch_operands = 0 : i64, tpu.core_type = #tpu.core_type<tc>, window_params = [{transform_indices = @transform_0, window_bounds = array<i64: 2, 768>}, {transform_indices = @transform_1, window_bounds = array<i64: 2, 768>}, {pipeline_mode = #tpu.pipeline_mode<synchronous>, transform_indices = @transform_2, window_bounds = array<i64: 768, 768>}, {pipeline_mode = #tpu.pipeline_mode<synchronous>, transform_indices = @transform_3, window_bounds = array<i64: 1, 768>}, {pipeline_mode = #tpu.pipeline_mode<synchronous>, transform_indices = @transform_4, window_bounds = array<i64: 1536, 128>}, {pipeline_mode = #tpu.pipeline_mode<synchronous>, transform_indices = @transform_5, window_bounds = array<i64: 1, 128>}, {transform_indices = @transform_6, window_bounds = array<i64: 2, 128>}]} {
    %c0 = arith.constant 0 : index
    %c0_0 = arith.constant 0 : index
    %0 = vector.load %arg2[%c0, %c0_0] : memref<2x768xbf16, #tpu.memory_space<vmem>>, vector<2x768xbf16>
    %c0_1 = arith.constant 0 : index
    %c0_2 = arith.constant 0 : index
    %1 = vector.load %arg3[%c0_1, %c0_2] : memref<768x768xbf16, #tpu.memory_space<vmem>>, vector<768x768xbf16>
    %cst = arith.constant dense<0.000000e+00> : vector<2x768xf32>
    %2 = tpu.matmul %0, %1, %cst {dimension_numbers = #tpu.dot_dimension_numbers<[1], [0], [0], [1], [0, 0, 1, 1], [], []>} : vector<2x768xbf16>, vector<768x768xbf16>, vector<2x768xf32> -> vector<2x768xf32>
    %c0_3 = arith.constant 0 : index
    %c0_4 = arith.constant 0 : index
    %3 = vector.load %arg4[%c0_3, %c0_4] : memref<1x768xf32, #tpu.memory_space<vmem>>, vector<1x768xf32>
    %4 = vector.broadcast %3 : vector<1x768xf32> to vector<2x768xf32>
    %5 = arith.addf %2, %4 : vector<2x768xf32>
    %6 = math.tanh %5 : vector<2x768xf32>
    %c0_5 = arith.constant 0 : index
    %c0_6 = arith.constant 0 : index
    %7 = vector.load %arg1[%c0_5, %c0_6] : memref<2x768xbf16, #tpu.memory_space<vmem>>, vector<2x768xbf16>
    %8 = arith.truncf %6 : vector<2x768xf32> to vector<2x768xbf16>
    %9 = tpu.concatenate %7, %8 in 1 : vector<2x768xbf16>, vector<2x768xbf16> -> vector<2x1536xbf16>
    %c0_7 = arith.constant 0 : index
    %c0_8 = arith.constant 0 : index
    %10 = vector.load %arg5[%c0_7, %c0_8] : memref<1536x128xbf16, #tpu.memory_space<vmem>>, vector<1536x128xbf16>
    %cst_9 = arith.constant dense<0.000000e+00> : vector<2x128xf32>
    %11 = tpu.matmul %9, %10, %cst_9 {dimension_numbers = #tpu.dot_dimension_numbers<[1], [0], [0], [1], [0, 0, 1, 1], [], []>} : vector<2x1536xbf16>, vector<1536x128xbf16>, vector<2x128xf32> -> vector<2x128xf32>
    %c0_10 = arith.constant 0 : index
    %c0_11 = arith.constant 0 : index
    %12 = vector.load %arg6[%c0_10, %c0_11] : memref<1x128xf32, #tpu.memory_space<vmem>>, vector<1x128xf32>
    %13 = vector.broadcast %12 : vector<1x128xf32> to vector<2x128xf32>
    %14 = arith.addf %11, %13 : vector<2x128xf32>
    %c0_12 = arith.constant 0 : index
    %c0_13 = arith.constant 0 : index
    %15 = vector.load %arg7[%c0_12, %c0_13] : memref<2x128xf32, #tpu.memory_space<vmem>>, vector<2x128xf32>
    tpu.vector_store %arg7[%c0_12, %c0_13], %14 {strides = array<i32>} : memref<2x128xf32, #tpu.memory_space<vmem>>, vector<2x128xf32>,
    return
  }
  func.func @transform_0(%arg0: i32) -> (i32, i32) {
    %c0_i32 = arith.constant 0 : i32
    %c0_i32_0 = arith.constant 0 : i32
    return %arg0, %c0_i32 : i32, i32
  }
  func.func @transform_1(%arg0: i32) -> (i32, i32) {
    %c0_i32 = arith.constant 0 : i32
    %c0_i32_0 = arith.constant 0 : i32
    return %arg0, %c0_i32 : i32, i32
  }
  func.func @transform_2(%arg0: i32) -> (i32, i32) {
    %c0_i32 = arith.constant 0 : i32
    %c0_i32_0 = arith.constant 0 : i32
    %c0_i32_1 = arith.constant 0 : i32
    return %c0_i32, %c0_i32_0 : i32, i32
  }
  func.func @transform_3(%arg0: i32) -> (i32, i32) {
    %c0_i32 = arith.constant 0 : i32
    %c0_i32_0 = arith.constant 0 : i32
    %c0_i32_1 = arith.constant 0 : i32
    return %c0_i32, %c0_i32_0 : i32, i32
  }
  func.func @transform_4(%arg0: i32) -> (i32, i32) {
    %c0_i32 = arith.constant 0 : i32
    %c0_i32_0 = arith.constant 0 : i32
    %c0_i32_1 = arith.constant 0 : i32
    return %c0_i32, %c0_i32_0 : i32, i32
  }
  func.func @transform_5(%arg0: i32) -> (i32, i32) {
    %c0_i32 = arith.constant 0 : i32
    %c0_i32_0 = arith.constant 0 : i32
    %c0_i32_1 = arith.constant 0 : i32
    return %c0_i32, %c0_i32_0 : i32, i32
  }
  func.func @transform_6(%arg0: i32) -> (i32, i32) {
    %c0_i32 = arith.constant 0 : i32
    %c0_i32_0 = arith.constant 0 : i32
    return %arg0, %c0_i32 : i32, i32
  }
}

</mosaic_0001>

<bundles_post_ra>
// kernel: tpu_custom_call.1
= control target key start
LH: loop header
LB: loop body
LE: loop exit
PB: predicated region body
PF: predicated region fallthrough
CT: control target
= control target key end

     0   :  { %11 = vsyncpa [#allocation3], 0  ;;  %s4887_s0 = inlined_call_operand.hbm [shape: bf16[2,768], index: 0, kind: input, shape index: {}]   ;;  %s4888_s1 = inlined_call_operand.hbm [shape: bf16[2,768], index: 1, kind: input, shape index: {}]   ;;  %s4889_s2 = inlined_call_operand.hbm [shape: bf16[768,768], index: 2, kind: input, shape index: {}]   ;;  %s4890_s3 = inlined_call_operand.hbm [shape: f32[1,768], index: 3, kind: input, shape index: {}]   ;;  %s4891_s4 = inlined_call_operand.hbm [shape: bf16[1536,128], index: 4, kind: input, shape index: {}]   ;;  %s4892_s5 = inlined_call_operand.hbm [shape: f32[1,128], index: 5, kind: input, shape index: {}]   ;;  %s4893_s6 = inlined_call_operand.hbm [shape: f32[2,128], index: 6, kind: output, shape index: {}]  }
   0x1   :  { %12 = vsyncpa [#allocation6], 0 }
   0x2   :  { %13 = vsyncpa [#allocation9], 0 }
   0x3   :  { %14 = vsyncpa [#allocation12], 0 }
   0x4   :  { %15 = vsyncpa [#allocation4], 0  ;;  %s4649_s21 = smov [#allocation5]   ;;  %s4650_s23 = smov [#allocation8]  }
   0x5   :  { %s32_s22 = sshll.u32 %s4649_s21, 4  ;;  %s54_s24 = sshll.u32 %s4650_s23, 4  ;;  %s33_s22 = int_to_ptr.vmem [resolvable:$true] %s32_s22  ;;  %s55_s24 = int_to_ptr.vmem [resolvable:$true] %s54_s24 }
   0x6   :  { %s4485_s27 = scalar_lea.hbm %s4888_s1, 96 }
   0x7   :  { %p4486_p0 = scmp.ne.s32.totalorder %s4888_s1, %s4485_s27  ;;  %p4489_p1 = scmp.lt.u32.totalorder %s4485_s27, %s4888_s1 }
   0x9   :  { %p4491_p2 = pnand %p4489_p1, %p4486_p0 }
   0xb   :  { %4494 = shalt.err (!%p4491_p2)
}
   0xc   :  { %s4495_s8 = scalar_lea.vmem %s33_s22, 96  ;;  %p4500_p4 = scmp.lt.s32.totalorder %s33_s22, %s33_s22 }
   0xd   :  { %p4496_p3 = scmp.ne.s32.totalorder %s33_s22, %s4495_s8  ;;  %p4501_p5 = scmp.lt.s32.totalorder %s4495_s8, %s4495_s8 }
   0xf   :  { %p4502_p6 = por %p4501_p5, %p4500_p4 }
  0x11   :  { %p4503_p7 = pnand %p4502_p6, %p4496_p3 }
  0x13   :  { %4506 = shalt.err (!%p4503_p7)
}
  0x14   :  { %35 = dma.hbm_to_vmem [thread:$0]  %s4888_s1, 96, %s33_s22, [#allocation6]  }
  0x15   :  { %s4507_s13 = scalar_lea.hbm %s4890_s3, 96 }
  0x16   :  { %p4508_p8 = scmp.ne.s32.totalorder %s4890_s3, %s4507_s13  ;;  %p4511_p9 = scmp.lt.u32.totalorder %s4507_s13, %s4890_s3 }
  0x18   :  { %p4513_p10 = pnand %p4511_p9, %p4508_p8 }
  0x1a   :  { %4516 = shalt.err (!%p4513_p10)
}
  0x1b   :  { %s4517_s18 = scalar_lea.vmem %s55_s24, 96  ;;  %p4522_p12 = scmp.lt.s32.totalorder %s55_s24, %s55_s24 }
  0x1c   :  { %p4518_p11 = scmp.ne.s32.totalorder %s55_s24, %s4517_s18  ;;  %p4523_p13 = scmp.lt.s32.totalorder %s4517_s18, %s4517_s18 }
  0x1e   :  { %p4524_p0 = por %p4523_p13, %p4522_p12 }
  0x20   :  { %p4525_p1 = pnand %p4524_p0, %p4518_p11 }
  0x22   :  { %4528 = shalt.err (!%p4525_p1)
}
  0x23   :  { %57 = dma.hbm_to_vmem [thread:$0]  %s4890_s3, 96, %s55_s24, [#allocation9]  }
  0x24   :  { %s4651_s20 = smov [#allocation2]   ;;  %s4652_s22 = smov [#allocation7]  }
  0x25   :  { %s22_s21 = sshll.u32 %s4651_s20, 4  ;;  %s41_s23 = sshll.u32 %s4652_s22, 4  ;;  %s23_s21 = int_to_ptr.vmem [resolvable:$true] %s22_s21  ;;  %s4720_s23 = int_to_ptr.vmem [resolvable:$true] %s41_s23 }
  0x26   :  { %s4529_s27 = scalar_lea.hbm %s4887_s0, 96 }
  0x27   :  { %p4530_p2 = scmp.ne.s32.totalorder %s4887_s0, %s4529_s27  ;;  %p4533_p3 = scmp.lt.u32.totalorder %s4529_s27, %s4887_s0 }
  0x29   :  { %p4535_p4 = pnand %p4533_p3, %p4530_p2 }
  0x2b   :  { %4538 = shalt.err (!%p4535_p4)
}
  0x2c   :  { %s4539_s3 = scalar_lea.vmem %s23_s21, 96  ;;  %p4544_p6 = scmp.lt.s32.totalorder %s23_s21, %s23_s21 }
  0x2d   :  { %p4540_p5 = scmp.ne.s32.totalorder %s23_s21, %s4539_s3  ;;  %p4545_p7 = scmp.lt.s32.totalorder %s4539_s3, %s4539_s3 }
  0x2f   :  { %p4546_p8 = por %p4545_p7, %p4544_p6 }
  0x31   :  { %p4547_p9 = pnand %p4546_p8, %p4540_p5 }
  0x33   :  { %4550 = shalt.err (!%p4547_p9)
}
  0x34   :  { %25 = dma.hbm_to_vmem [thread:$0]  %s4887_s0, 96, %s23_s21, [#allocation3]  }
  0x35   :  { %s4551_s11 = scalar_lea.hbm %s4889_s2, 36864 }
  0x36   :  { %p4552_p10 = scmp.ne.s32.totalorder %s4889_s2, %s4551_s11  ;;  %p4555_p11 = scmp.lt.u32.totalorder %s4551_s11, %s4889_s2 }
  0x38   :  { %p4557_p12 = pnand %p4555_p11, %p4552_p10 }
  0x3a   :  { %4560 = shalt.err (!%p4557_p12)
}
  0x3b   :  { %s4561_s16 = scalar_lea.vmem %s4720_s23, 36864  ;;  %p4566_p0 = scmp.lt.s32.totalorder %s4720_s23, %s4720_s23 }
  0x3c   :  { %p4562_p13 = scmp.ne.s32.totalorder %s4720_s23, %s4561_s16  ;;  %p4567_p1 = scmp.lt.s32.totalorder %s4561_s16, %s4561_s16 }
  0x3e   :  { %p4568_p2 = por %p4567_p1, %p4566_p0 }
  0x40   :  { %p4569_p3 = pnand %p4568_p2, %p4562_p13 }
  0x42   :  { %4572 = shalt.err (!%p4569_p3)
}
  0x43   :  { %s4653_s0 = smov 384   ;;  %s4654_s17 = smov 24  }
  0x44   :  { %47 = dma.hbm_to_vmem [thread:$0]  %s4889_s2, 36864, %s4720_s23, [#allocation6], %s4653_s0, %s4653_s0, %s4654_s17  }
  0x45   :  { %s4655_s19 = smov [#allocation10]   ;;  %s4573_s25 = scalar_lea.hbm %s4891_s4, 12288 }
  0x46   :  { %s63_s20 = sshll.u32 %s4655_s19, 4  ;;  %p4574_p4 = scmp.ne.s32.totalorder %s4891_s4, %s4573_s25  ;;  %s64_s20 = int_to_ptr.vmem [resolvable:$true] %s63_s20 }
  0x47   :  { %p4577_p5 = scmp.lt.u32.totalorder %s4573_s25, %s4891_s4 }
  0x49   :  { %p4579_p6 = pnand %p4577_p5, %p4574_p4 }
  0x4b   :  { %4582 = shalt.err (!%p4579_p6)
}
  0x4c   :  { %s4583_s30 = scalar_lea.vmem %s64_s20, 12288  ;;  %p4588_p8 = scmp.lt.s32.totalorder %s64_s20, %s64_s20 }
  0x4d   :  { %p4584_p7 = scmp.ne.s32.totalorder %s64_s20, %s4583_s30  ;;  %p4589_p9 = scmp.lt.s32.totalorder %s4583_s30, %s4583_s30 }
  0x4f   :  { %p4590_p10 = por %p4589_p9, %p4588_p8 }
  0x51   :  { %p4591_p11 = pnand %p4590_p10, %p4584_p7 }
  0x53   :  { %4594 = shalt.err (!%p4591_p11)
}
  0x54   :  { %s4656_s2 = smov 64   ;;  %s4657_s23 = smov 4  }
  0x55   :  { %69 = dma.hbm_to_vmem [thread:$0]  %s4891_s4, 12288, %s64_s20, [#allocation9], %s4656_s2, %s4656_s2, %s4657_s23  }
  0x56   :  { %s4658_s24 = smov [#allocation11]   ;;  %s4595_s11 = scalar_lea.hbm %s4892_s5, 16 }
  0x57   :  { %s76_s8 = sshll.u32 %s4658_s24, 4  ;;  %p4596_p12 = scmp.ne.s32.totalorder %s4892_s5, %s4595_s11  ;;  %s77_s8 = int_to_ptr.vmem [resolvable:$true] %s76_s8 }
  0x58   :  { %p4599_p13 = scmp.lt.u32.totalorder %s4595_s11, %s4892_s5 }
  0x5a   :  { %p4601_p0 = pnand %p4599_p13, %p4596_p12 }
  0x5c   :  { %4604 = shalt.err (!%p4601_p0)
}
  0x5d   :  { %s4605_s16 = scalar_lea.vmem %s77_s8, 16  ;;  %s4609_s4 = scalar_lea.vmem %s77_s8, 32 }
  0x5e   :  { %p4606_p1 = scmp.ne.s32.totalorder %s77_s8, %s4605_s16  ;;  %p4610_p2 = scmp.lt.s32.totalorder %s77_s8, %s77_s8 }
  0x5f   :  { %p4611_p3 = scmp.lt.s32.totalorder %s4609_s4, %s4605_s16 }
  0x61   :  { %p4612_p4 = por %p4611_p3, %p4610_p2 }
  0x63   :  { %p4613_p5 = pnand %p4612_p4, %p4606_p1 }
  0x65   :  { %4616 = shalt.err (!%p4613_p5)
}
  0x66   :  { %79 = dma.hbm_to_vmem [thread:$0]  %s4892_s5, 16, %s77_s8, [#allocation12]  }
  0x67   :  { %4639 = dma.done.wait [#allocation3], 96  }
  0x68   :  { %4640 = vsyncadd [#allocation3], 4294967200 }
  0x69   :  { %4641 = dma.done.wait [#allocation6], 36960  }
  0x6a   :  { %4642 = vsyncadd [#allocation6], 4294930336 }
  0x6b   :  { %4643 = dma.done.wait [#allocation9], 12384  }
  0x6c   :  { %4644 = vsyncadd [#allocation9], 4294954912 }
  0x6d   :  { %4645 = dma.done.wait [#allocation12], 16  }
  0x6e   :  { %4646 = vsyncadd [#allocation12], 4294967280  ;;  %v3943_v0 = vld [vmem:[#allocation7 + $0x4] ss:$24 sps:$4 sm:$0xff]   ;;  %v3945_v1 = vld [vmem:[#allocation7] ss:$24 sps:$4 sm:$0xff]   ;;  %v390_v21 = vlaneseq }
  0x6f   :  { %1914 = vmatprep.subr.bf16.mxu0 %v3943_v0  ;;  %v3946_v2 = vld [vmem:[#allocation7 + $0x34] ss:$24 sps:$4 sm:$0xff]   ;;  %v3948_v3 = vld [vmem:[#allocation7 + $0x30] ss:$24 sps:$4 sm:$0xff]   ;;  %v3949_v4 = vld [vmem:[#allocation7 + $0x64] ss:$24 sps:$4 sm:$0xff]  }
  0x70   :  { %1915 = vmatpush1.bf16.msra.mxu0 %v3945_v1  ;;  %v3951_v5 = vld [vmem:[#allocation7 + $0x60] ss:$24 sps:$4 sm:$0xff]   ;;  %v3952_v6 = vld [vmem:[#allocation7 + $0x94] ss:$24 sps:$4 sm:$0xff]   ;;  %v3954_v7 = vld [vmem:[#allocation7 + $0x90] ss:$24 sps:$4 sm:$0xff]  }
  0x71   :  { %1916 = vmatprep.subr.bf16.mxu0 %v3946_v2  ;;  %v3967_v8 = vld [vmem:[#allocation7 + $0xc] ss:$24 sps:$4 sm:$0xff]   ;;  %v3971_v10 = vld [vmem:[#allocation7 + $0x8] ss:$24 sps:$4 sm:$0xff]   ;;  %v3973_v11 = vld [vmem:[#allocation7 + $0x3c] ss:$24 sps:$4 sm:$0xff]  }
  0x72   :  { %v3955_v9 = vld [vmem:[#allocation7 + $0xc4] ss:$24 sps:$4 sm:$0xff]   ;;  %2037 = vmatprep.subr.bf16.mxu1 %v3967_v8  ;;  %v3957_v12 = vld [vmem:[#allocation7 + $0xc0] ss:$24 sps:$4 sm:$0xff]   ;;  %v3958_v13 = vld [vmem:[#allocation7 + $0xf4] ss:$24 sps:$4 sm:$0xff]  }
  0x73   :  { %2038 = vmatpush1.bf16.msra.mxu1 %v3971_v10  ;;  %v3977_v14 = vld [vmem:[#allocation7 + $0x38] ss:$24 sps:$4 sm:$0xff]   ;;  %v3979_v15 = vld [vmem:[#allocation7 + $0x6c] ss:$24 sps:$4 sm:$0xff]   ;;  %v3983_v17 = vld [vmem:[#allocation7 + $0x68] ss:$24 sps:$4 sm:$0xff]  }
  0x74   :  { %1917 = vmatpush1.bf16.msra.mxu0 %v3948_v3  ;;  %2039 = vmatprep.subr.bf16.mxu1 %v3973_v11  ;;  %v3960_v16 = vld [vmem:[#allocation7 + $0xf0] ss:$24 sps:$4 sm:$0xff]   ;;  %v3985_v18 = vld [vmem:[#allocation7 + $0x9c] ss:$24 sps:$4 sm:$0xff]   ;;  %v4659_v22 = vmov 1966171168  }
  0x75   :  { %1918 = vmatprep.subr.bf16.mxu0 %v3949_v4  ;;  %v3961_v19 = vld [vmem:[#allocation7 + $0x124] ss:$24 sps:$4 sm:$0xff]   ;;  %v3989_v20 = vld [vmem:[#allocation7 + $0x98] ss:$24 sps:$4 sm:$0xff]   ;;  %v423_v23 = vunpack.c.l.s4 %v4659_v22  ;;  %v3964_v26 = vld [vmem:[#allocation7 + $0x154] ss:$24 sps:$4 sm:$0xff]  }
  0x76   :  { %v3963_v24 = vld [vmem:[#allocation7 + $0x120] ss:$24 sps:$4 sm:$0xff]   ;;  %v3991_v25 = vld [vmem:[#allocation7 + $0xcc] ss:$24 sps:$4 sm:$0xff]   ;;  %v3966_v27 = vld [vmem:[#allocation7 + $0x150] ss:$24 sps:$4 sm:$0xff]  }
  0x77   :  { %2040 = vmatpush1.bf16.msra.mxu1 %v3977_v14  ;;  %v3995_v28 = vld [vmem:[#allocation7 + $0xc8] ss:$24 sps:$4 sm:$0xff]   ;;  %v4775_v29 = vshrl.u32 %v390_v21, 7  ;;  %v424_v30 = vunpack.c.0.s8 %v423_v23  ;;  %v3997_v31 = vld [vmem:[#allocation7 + $0xfc] ss:$24 sps:$4 sm:$0xff]   ;;  %s4660_s5 = smov [#allocation13]  }
  0x78   :  { %1919 = vmatpush1.bf16.msra.mxu0 %v3951_v5  ;;  %2041 = vmatprep.subr.bf16.mxu1 %v3979_v15  ;;  %v3969_v32 = vld [vmem:[#allocation7 + $0x184] ss:$24 sps:$4 sm:$0xff]   ;;  %v4001_v33 = vld [vmem:[#allocation7 + $0xf8] ss:$24 sps:$4 sm:$0xff]   ;;  %v3975_v37 = vld [vmem:[#allocation7 + $0x1b4] ss:$24 sps:$4 sm:$0xff]  }
  0x79   :  { %1920 = vmatprep.subr.bf16.mxu0 %v3952_v6  ;;  %v4778_v34 = vsub.s32 %v424_v30, %v4775_v29  ;;  %v3972_v35 = vld [vmem:[#allocation7 + $0x180] ss:$24 sps:$4 sm:$0xff]   ;;  %v4003_v36 = vld [vmem:[#allocation7 + $0x12c] ss:$24 sps:$4 sm:$0xff]   ;;  %v3978_v39 = vld [vmem:[#allocation7 + $0x1b0] ss:$24 sps:$4 sm:$0xff]  }
  0x7a   :  { %v4780_v38 = vld [vmem:[#allocation5] sm:$0x3f]  ;;  %v4007_v40 = vld [vmem:[#allocation7 + $0x128] ss:$24 sps:$4 sm:$0xff]   ;;  %v4015_v48 = vld [vmem:[#allocation7 + $0x18c] ss:$24 sps:$4 sm:$0xff]  }
  0x7b   :  { %2042 = vmatpush1.bf16.msra.mxu1 %v3983_v17  ;;  %v428_v41 = vrot.slane %v4780_v38, %v4778_v34  ;;  %v4009_v42 = vld [vmem:[#allocation7 + $0x15c] ss:$24 sps:$4 sm:$0xff]   ;;  %v4013_v45 = vld [vmem:[#allocation7 + $0x158] ss:$24 sps:$4 sm:$0xff]   ;;  %v4020_v51 = vld [vmem:[#allocation7 + $0x188] ss:$24 sps:$4 sm:$0xff]  }
  0x7c   :  { %1921 = vmatpush1.bf16.msra.mxu0 %v3954_v7  ;;  %2043 = vmatprep.subr.bf16.mxu1 %v3985_v18  ;;  %v3981_v43 = vld [vmem:[#allocation7 + $0x1e4] ss:$24 sps:$4 sm:$0xff]   ;;  %v3984_v47 = vld [vmem:[#allocation7 + $0x1e0] ss:$24 sps:$4 sm:$0xff]   ;;  %v3987_v49 = vld [vmem:[#allocation7 + $0x214] ss:$24 sps:$4 sm:$0xff]  }
  0x7d   :  { %1922 = vmatprep.subr.bf16.mxu0 %v3955_v9  ;;  %v436_v44 = vcombine.high %v428_v41, %v428_v41  ;;  %v3990_v50 = vld [vmem:[#allocation7 + $0x210] ss:$24 sps:$4 sm:$0xff]   ;;  %v4021_v52 = vld [vmem:[#allocation7 + $0x1bc] ss:$24 sps:$4 sm:$0xff]   ;;  %v3996_v55 = vld [vmem:[#allocation7 + $0x240] ss:$24 sps:$4 sm:$0xff]   ;;  %v4790_v7 = vrot.slane %v428_v41, %v4778_v34 }
  0x7e   :  { %v3993_v53 = vld [vmem:[#allocation7 + $0x244] ss:$24 sps:$4 sm:$0xff]   ;;  %v4026_v54 = vld [vmem:[#allocation7 + $0x1b8] ss:$24 sps:$4 sm:$0xff]   ;;  %v3999_v57 = vld [vmem:[#allocation7 + $0x274] ss:$24 sps:$4 sm:$0xff]  }
  0x7f   :  { %2044 = vmatpush1.bf16.msra.mxu1 %v3989_v20  ;;  %v4785_v46 = vrot.slane %v436_v44, %v4778_v34  ;;  %v4027_v56 = vld [vmem:[#allocation7 + $0x1ec] ss:$24 sps:$4 sm:$0xff]   ;;  %v4002_v58 = vld [vmem:[#allocation7 + $0x270] ss:$24 sps:$4 sm:$0xff]   ;;  %v4033_v60 = vld [vmem:[#allocation7 + $0x21c] ss:$24 sps:$4 sm:$0xff]  }
  0x80   :  { %1923 = vmatpush1.bf16.msra.mxu0 %v3957_v12  ;;  %2045 = vmatprep.subr.bf16.mxu1 %v3991_v25  ;;  %v4032_v59 = vld [vmem:[#allocation7 + $0x1e8] ss:$24 sps:$4 sm:$0xff]   ;;  %v4005_v61 = vld [vmem:[#allocation7 + $0x2a4] ss:$24 sps:$4 sm:$0xff]   ;;  %v4038_v63 = vld [vmem:[#allocation7 + $0x218] ss:$24 sps:$4 sm:$0xff]  }
  0x81   :  { %1924 = vmatprep.subr.bf16.mxu0 %v3958_v13  ;;  %1946 = vmatprep.mubr.bf16.mxu0 %v4785_v46  ;;  %v4008_v62 = vld [vmem:[#allocation7 + $0x2a0] ss:$24 sps:$4 sm:$0xff]   ;;  %v4039_v0 = vld [vmem:[#allocation7 + $0x24c] ss:$24 sps:$4 sm:$0xff]   ;;  %v4014_v2 = vld [vmem:[#allocation7 + $0x2d0] ss:$24 sps:$4 sm:$0xff]   ;;  %v4794_v11 = vcombine.high %v4785_v46, %v4785_v46 }
  0x82   :  { %2069 = vmatprep.mubr.bf16.mxu1 %v4785_v46  ;;  %v4011_v1 = vld [vmem:[#allocation7 + $0x2d4] ss:$24 sps:$4 sm:$0xff]   ;;  %v4044_v3 = vld [vmem:[#allocation7 + $0x248] ss:$24 sps:$4 sm:$0xff]   ;;  %v4019_v5 = vld [vmem:[#allocation7 + $0x304] ss:$24 sps:$4 sm:$0xff]  }
  0x83   :  { %2046 = vmatpush1.bf16.msra.mxu1 %v3995_v28  ;;  %v4045_v4 = vld [vmem:[#allocation7 + $0x27c] ss:$24 sps:$4 sm:$0xff]   ;;  %v4017_v6 = vld [vmem:[#allocation7 + $0x300] ss:$24 sps:$4 sm:$0xff]   ;;  %v4051_v9 = vld [vmem:[#allocation7 + $0x2ac] ss:$24 sps:$4 sm:$0xff]  }
  0x84   :  { %1925 = vmatpush1.bf16.msra.mxu0 %v3960_v16  ;;  %2047 = vmatprep.subr.bf16.mxu1 %v3997_v31  ;;  %v4050_v8 = vld [vmem:[#allocation7 + $0x278] ss:$24 sps:$4 sm:$0xff]   ;;  %v4025_v10 = vld [vmem:[#allocation7 + $0x334] ss:$24 sps:$4 sm:$0xff]   ;;  %v4056_v13 = vld [vmem:[#allocation7 + $0x2a8] ss:$24 sps:$4 sm:$0xff]  }
  0x85   :  { %1926 = vmatprep.subr.bf16.mxu0 %v3961_v19  ;;  %v4023_v12 = vld [vmem:[#allocation7 + $0x330] ss:$24 sps:$4 sm:$0xff]   ;;  %v4057_v14 = vld [vmem:[#allocation7 + $0x2dc] ss:$24 sps:$4 sm:$0xff]   ;;  %v4029_v16 = vld [vmem:[#allocation7 + $0x360] ss:$24 sps:$4 sm:$0xff]  }
  0x86   :  { %v4031_v15 = vld [vmem:[#allocation7 + $0x364] ss:$24 sps:$4 sm:$0xff]   ;;  %v4062_v17 = vld [vmem:[#allocation7 + $0x2d8] ss:$24 sps:$4 sm:$0xff]   ;;  %v4037_v19 = vld [vmem:[#allocation7 + $0x394] ss:$24 sps:$4 sm:$0xff]  }
  0x87   :  { %2048 = vmatpush1.bf16.msra.mxu1 %v4001_v33  ;;  %v4065_v18 = vld [vmem:[#allocation7 + $0x30c] ss:$24 sps:$4 sm:$0xff]   ;;  %v4035_v20 = vld [vmem:[#allocation7 + $0x390] ss:$24 sps:$4 sm:$0xff]   ;;  %v4071_v22 = vld [vmem:[#allocation7 + $0x33c] ss:$24 sps:$4 sm:$0xff]  }
  0x88   :  { %1927 = vmatpush1.bf16.msra.mxu0 %v3963_v24  ;;  %2049 = vmatprep.subr.bf16.mxu1 %v4003_v36  ;;  %v4063_v21 = vld [vmem:[#allocation7 + $0x308] ss:$24 sps:$4 sm:$0xff]   ;;  %v4043_v23 = vld [vmem:[#allocation7 + $0x3c4] ss:$24 sps:$4 sm:$0xff]   ;;  %v4069_v25 = vld [vmem:[#allocation7 + $0x338] ss:$24 sps:$4 sm:$0xff]  }
  0x89   :  { %1928 = vmatprep.subr.bf16.mxu0 %v3964_v26  ;;  %v4041_v24 = vld [vmem:[#allocation7 + $0x3c0] ss:$24 sps:$4 sm:$0xff]   ;;  %v4077_v26 = vld [vmem:[#allocation7 + $0x36c] ss:$24 sps:$4 sm:$0xff]   ;;  %v4047_v28 = vld [vmem:[#allocation7 + $0x3f0] ss:$24 sps:$4 sm:$0xff]  }
  0x8a   :  { %v4075_v30 = vld [vmem:[#allocation7 + $0x368] ss:$24 sps:$4 sm:$0xff]   ;;  %v4083_v31 = vld [vmem:[#allocation7 + $0x39c] ss:$24 sps:$4 sm:$0xff]   ;;  %v4089_v36 = vld [vmem:[#allocation7 + $0x3cc] ss:$24 sps:$4 sm:$0xff]  }
  0x8b   :  { %2050 = vmatpush1.bf16.msra.mxu1 %v4007_v40  ;;  %v4053_v33 = vld [vmem:[#allocation7 + $0x420] ss:$24 sps:$4 sm:$0xff]   ;;  %v4095_v41 = vld [vmem:[#allocation7 + $0x3fc] ss:$24 sps:$4 sm:$0xff]   ;;  %s3372_s18 = sshll.u32 %s4660_s5, 4  ;;  %s3373_s18 = int_to_ptr.vmem [resolvable:$true] %s3372_s18 }
  0x8c   :  { %1929 = vmatpush1.bf16.msra.mxu0 %v3966_v27  ;;  %2051 = vmatprep.subr.bf16.mxu1 %v4009_v42  ;;  %v4049_v27 = vld [vmem:[#allocation7 + $0x3f4] ss:$24 sps:$4 sm:$0xff]   ;;  %v4087_v40 = vld [vmem:[#allocation7 + $0x3c8] ss:$24 sps:$4 sm:$0xff]   ;;  %v4068_v42 = vld [vmem:[#allocation7 + $0x484] ss:$24 sps:$4 sm:$0xff]   ;;  %p4622_p7 = scmp.lt.s32.totalorder %s3373_s18, %s3373_s18 }
  0x8d   :  { %1930 = vmatprep.subr.bf16.mxu0 %v3969_v32  ;;  %v4055_v32 = vld [vmem:[#allocation7 + $0x424] ss:$24 sps:$4 sm:$0xff]   ;;  %v4093_v44 = vld [vmem:[#allocation7 + $0x3f8] ss:$24 sps:$4 sm:$0xff]   ;;  %s4617_s1 = scalar_lea.vmem %s3373_s18, 32 }
  0x8e   :  { %p4618_p6 = scmp.ne.s32.totalorder %s3373_s18, %s4617_s1  ;;  %p4623_p8 = scmp.lt.s32.totalorder %s4617_s1, %s4617_s1 }
  0x8f   :  { %2052 = vmatpush1.bf16.msra.mxu1 %v4013_v45  ;;  %v4101_v45 = vld [vmem:[#allocation7 + $0x42c] ss:$24 sps:$4 sm:$0xff]  }
  0x90   :  { %1931 = vmatpush1.bf16.msra.mxu0 %v3972_v35  ;;  %2053 = vmatprep.subr.bf16.mxu1 %v4015_v48  ;;  %v4081_v35 = vld [vmem:[#allocation7 + $0x398] ss:$24 sps:$4 sm:$0xff]   ;;  %p4624_p9 = por %p4623_p8, %p4622_p7 }
  0x91   :  { %1932 = vmatprep.subr.bf16.mxu0 %v3975_v37  ;;  %v4061_v37 = vld [vmem:[#allocation7 + $0x454] ss:$24 sps:$4 sm:$0xff]   ;;  %v4072_v48 = vld [vmem:[#allocation7 + $0x4b0] ss:$24 sps:$4 sm:$0xff]  }
  0x92   :  { %p4625_p10 = pnand %p4624_p9, %p4618_p6 }
  0x93   :  { %2054 = vmatpush1.bf16.msra.mxu1 %v4020_v51  ;;  %v4080_v51 = vld [vmem:[#allocation7 + $0x4e4] ss:$24 sps:$4 sm:$0xff]  }
  0x94   :  { %1933 = vmatpush1.bf16.msra.mxu0 %v3978_v39  ;;  %2055 = vmatprep.subr.bf16.mxu1 %v4021_v52  ;;  %v4059_v39 = vld [vmem:[#allocation7 + $0x450] ss:$24 sps:$4 sm:$0xff]   ;;  %v4078_v52 = vld [vmem:[#allocation7 + $0x4e0] ss:$24 sps:$4 sm:$0xff]  }
  0x95   :  { %1934 = vmatprep.subr.bf16.mxu0 %v3981_v43  ;;  %v4066_v43 = vld [vmem:[#allocation7 + $0x480] ss:$24 sps:$4 sm:$0xff]  }
  0x97   :  { %2056 = vmatpush1.bf16.msra.mxu1 %v4026_v54  ;;  %v4113_v54 = vld [vmem:[#allocation7 + $0x48c] ss:$24 sps:$4 sm:$0xff]  }
  0x98   :  { %1935 = vmatpush1.bf16.msra.mxu0 %v3984_v47  ;;  %2057 = vmatprep.subr.bf16.mxu1 %v4027_v56  ;;  %v4074_v47 = vld [vmem:[#allocation7 + $0x4b4] ss:$24 sps:$4 sm:$0xff]   ;;  %v4084_v56 = vld [vmem:[#allocation7 + $0x510] ss:$24 sps:$4 sm:$0xff]  }
  0x99   :  { %1936 = vmatprep.subr.bf16.mxu0 %v3987_v49  ;;  %v4099_v49 = vld [vmem:[#allocation7 + $0x428] ss:$24 sps:$4 sm:$0xff]  }
  0x9b   :  { %2058 = vmatpush1.bf16.msra.mxu1 %v4032_v59  ;;  %v4092_v59 = vld [vmem:[#allocation7 + $0x544] ss:$24 sps:$4 sm:$0xff]  }
  0x9c   :  { %1937 = vmatpush1.bf16.msra.mxu0 %v3990_v50  ;;  %2059 = vmatprep.subr.bf16.mxu1 %v4033_v60  ;;  %v4107_v50 = vld [vmem:[#allocation7 + $0x45c] ss:$24 sps:$4 sm:$0xff]   ;;  %v4090_v60 = vld [vmem:[#allocation7 + $0x540] ss:$24 sps:$4 sm:$0xff]  }
  0x9d   :  { %1938 = vmatprep.subr.bf16.mxu0 %v3993_v53  ;;  %v4105_v53 = vld [vmem:[#allocation7 + $0x458] ss:$24 sps:$4 sm:$0xff]  }
  0x9f   :  { %2060 = vmatpush1.bf16.msra.mxu1 %v4038_v63  ;;  %v4098_v63 = vld [vmem:[#allocation7 + $0x574] ss:$24 sps:$4 sm:$0xff]  }
  0xa0   :  { %1939 = vmatpush1.bf16.msra.mxu0 %v3996_v55  ;;  %2061 = vmatprep.subr.bf16.mxu1 %v4039_v0  ;;  %v4086_v55 = vld [vmem:[#allocation7 + $0x514] ss:$24 sps:$4 sm:$0xff]   ;;  %v4096_v0 = vld [vmem:[#allocation7 + $0x570] ss:$24 sps:$4 sm:$0xff]  }
  0xa1   :  { %1940 = vmatprep.subr.bf16.mxu0 %v3999_v57  ;;  %v4111_v57 = vld [vmem:[#allocation7 + $0x488] ss:$24 sps:$4 sm:$0xff]  }
  0xa3   :  { %2062 = vmatpush1.bf16.msra.mxu1 %v4044_v3  ;;  %v4104_v3 = vld [vmem:[#allocation7 + $0x5a4] ss:$24 sps:$4 sm:$0xff]  }
  0xa4   :  { %1941 = vmatpush1.bf16.msra.mxu0 %v4002_v58  ;;  %2063 = vmatprep.subr.bf16.mxu1 %v4045_v4  ;;  %v4119_v58 = vld [vmem:[#allocation7 + $0x4bc] ss:$24 sps:$4 sm:$0xff]   ;;  %v421_v4 = vcombine.high %v4780_v38, %v4780_v38 }
  0xa5   :  { %1942 = vmatprep.subr.bf16.mxu0 %v4005_v61  ;;  %v4117_v61 = vld [vmem:[#allocation7 + $0x4b8] ss:$24 sps:$4 sm:$0xff]  }
  0xa7   :  { %2064 = vmatpush1.bf16.msra.mxu1 %v4050_v8  ;;  %v4137_v8 = vld [vmem:[#allocation7 + $0x54c] ss:$24 sps:$4 sm:$0xff]  }
  0xa8   :  { %1943 = vmatpush1.bf16.msra.mxu0 %v4008_v62  ;;  %2065 = vmatprep.subr.bf16.mxu1 %v4051_v9  ;;  %v4125_v62 = vld [vmem:[#allocation7 + $0x4ec] ss:$24 sps:$4 sm:$0xff]  }
  0xa9   :  { %1944 = vmatprep.subr.bf16.mxu0 %v4011_v1  ;;  %v4123_v1 = vld [vmem:[#allocation7 + $0x4e8] ss:$24 sps:$4 sm:$0xff]   ;;  %v4110_v9 = vld [vmem:[#allocation7 + $0x5d4] ss:$24 sps:$4 sm:$0xff]  }
  0xab   :  { %2066 = vmatpush1.bf16.msra.mxu1 %v4056_v13  ;;  %v4135_v13 = vld [vmem:[#allocation7 + $0x548] ss:$24 sps:$4 sm:$0xff]  }
  0xac   :  { %1945 = vmatpush1.bf16.msra.mxu0 %v4014_v2  ;;  %2067 = vmatprep.subr.bf16.mxu1 %v4057_v14  ;;  %v4131_v2 = vld [vmem:[#allocation7 + $0x51c] ss:$24 sps:$4 sm:$0xff]  }
  0xad   :  { %1955 = vmatprep.subr.bf16.mxu0 %v4019_v5  ;;  %v4102_v5 = vld [vmem:[#allocation7 + $0x5a0] ss:$24 sps:$4 sm:$0xff]   ;;  %v4143_v14 = vld [vmem:[#allocation7 + $0x57c] ss:$24 sps:$4 sm:$0xff]  }
  0xaf   :  { %1947 = vmatmul.mubr.bf16.vlgmr.msra.gmra.mrb[0].mxu0 %v4790_v7  ;;  %2068 = vmatpush1.bf16.msra.mxu1 %v4062_v17  ;;  %v4809_v17 = vcombine.high %v4790_v7, %v4790_v7 }
  0xb0   :  { %1956 = vmatpush1.bf16.msra.mxu0 %v4017_v6  ;;  %1987 = vmatprep.mubr.bf16.mxu0 %v4794_v11  ;;  %v4129_v6 = vld [vmem:[#allocation7 + $0x518] ss:$24 sps:$4 sm:$0xff]  }
  0xb1   :  { %1957 = vmatprep.subr.bf16.mxu0 %v4025_v10  ;;  %2078 = vmatprep.subr.bf16.mxu1 %v4065_v18  ;;  %v4803_v10 = vrot.slane %v421_v4, %v4778_v34  ;;  %v4141_v18 = vld [vmem:[#allocation7 + $0x578] ss:$24 sps:$4 sm:$0xff]   ;;  %v4216_v4 = vld [vmem:[#allocation7 + $0x7bc] ss:$24 sps:$4 sm:$0xff]  }
  0xb2   :  { %2070 = vmatmul.mubr.bf16.vlgmr.msra.gmra.mrb[0].mxu1 %v4790_v7 }
  0xb3   :  { %2079 = vmatpush1.bf16.msra.mxu1 %v4063_v21  ;;  %2110 = vmatprep.mubr.bf16.mxu1 %v4794_v11  ;;  %v437_v38 = vcombine.high %v4803_v10, %v4803_v10 }
  0xb4   :  { %1958 = vmatpush1.bf16.msra.mxu0 %v4023_v12  ;;  %2080 = vmatprep.subr.bf16.mxu1 %v4071_v22  ;;  %v4108_v12 = vld [vmem:[#allocation7 + $0x5d0] ss:$24 sps:$4 sm:$0xff]  }
  0xb5   :  { %1959 = vmatprep.subr.bf16.mxu0 %v4031_v15  ;;  %v4116_v15 = vld [vmem:[#allocation7 + $0x604] ss:$24 sps:$4 sm:$0xff]   ;;  %v4812_v21 = vrot.slane %v437_v38, %v4778_v34  ;;  %v4120_v22 = vld [vmem:[#allocation7 + $0x630] ss:$24 sps:$4 sm:$0xff]  }
  0xb6   :  { %v4200_v38 = vld [vmem:[#allocation7 + $0x8a4] ss:$24 sps:$4 sm:$0xff]  }
  0xb7   :  { %2081 = vmatpush1.bf16.msra.mxu1 %v4069_v25  ;;  %v4128_v25 = vld [vmem:[#allocation7 + $0x664] ss:$24 sps:$4 sm:$0xff]  }
  0xb8   :  { %1960 = vmatpush1.bf16.msra.mxu0 %v4029_v16  ;;  %2082 = vmatprep.subr.bf16.mxu1 %v4077_v26  ;;  %v4114_v16 = vld [vmem:[#allocation7 + $0x600] ss:$24 sps:$4 sm:$0xff]  }
  0xb9   :  { %1961 = vmatprep.subr.bf16.mxu0 %v4037_v19  ;;  %v4149_v19 = vld [vmem:[#allocation7 + $0x5ac] ss:$24 sps:$4 sm:$0xff]   ;;  %v4126_v26 = vld [vmem:[#allocation7 + $0x660] ss:$24 sps:$4 sm:$0xff]  }
  0xbb   :  { %2083 = vmatpush1.bf16.msra.mxu1 %v4075_v30  ;;  %v4134_v30 = vld [vmem:[#allocation7 + $0x694] ss:$24 sps:$4 sm:$0xff]  }
  0xbc   :  { %1962 = vmatpush1.bf16.msra.mxu0 %v4035_v20  ;;  %2084 = vmatprep.subr.bf16.mxu1 %v4083_v31  ;;  %v4122_v20 = vld [vmem:[#allocation7 + $0x634] ss:$24 sps:$4 sm:$0xff]   ;;  %v4132_v31 = vld [vmem:[#allocation7 + $0x690] ss:$24 sps:$4 sm:$0xff]  }
  0xbd   :  { %1963 = vmatprep.subr.bf16.mxu0 %v4043_v23  ;;  %v4147_v23 = vld [vmem:[#allocation7 + $0x5a8] ss:$24 sps:$4 sm:$0xff]  }
  0xbf   :  { %2085 = vmatpush1.bf16.msra.mxu1 %v4081_v35  ;;  %v4140_v35 = vld [vmem:[#allocation7 + $0x6c4] ss:$24 sps:$4 sm:$0xff]  }
  0xc0   :  { %1964 = vmatpush1.bf16.msra.mxu0 %v4041_v24  ;;  %2086 = vmatprep.subr.bf16.mxu1 %v4089_v36  ;;  %v4155_v24 = vld [vmem:[#allocation7 + $0x5dc] ss:$24 sps:$4 sm:$0xff]   ;;  %v4138_v36 = vld [vmem:[#allocation7 + $0x6c0] ss:$24 sps:$4 sm:$0xff]  }
  0xc1   :  { %1965 = vmatprep.subr.bf16.mxu0 %v4049_v27  ;;  %v4153_v27 = vld [vmem:[#allocation7 + $0x5d8] ss:$24 sps:$4 sm:$0xff]  }
  0xc3   :  { %2087 = vmatpush1.bf16.msra.mxu1 %v4087_v40  ;;  %v4146_v40 = vld [vmem:[#allocation7 + $0x6f4] ss:$24 sps:$4 sm:$0xff]  }
  0xc4   :  { %1966 = vmatpush1.bf16.msra.mxu0 %v4047_v28  ;;  %2088 = vmatprep.subr.bf16.mxu1 %v4095_v41  ;;  %v4161_v28 = vld [vmem:[#allocation7 + $0x60c] ss:$24 sps:$4 sm:$0xff]   ;;  %v4144_v41 = vld [vmem:[#allocation7 + $0x6f0] ss:$24 sps:$4 sm:$0xff]  }
  0xc5   :  { %1967 = vmatprep.subr.bf16.mxu0 %v4055_v32  ;;  %v4159_v32 = vld [vmem:[#allocation7 + $0x608] ss:$24 sps:$4 sm:$0xff]  }
  0xc7   :  { %2089 = vmatpush1.bf16.msra.mxu1 %v4093_v44  ;;  %v4152_v44 = vld [vmem:[#allocation7 + $0x724] ss:$24 sps:$4 sm:$0xff]  }
  0xc8   :  { %1968 = vmatpush1.bf16.msra.mxu0 %v4053_v33  ;;  %2090 = vmatprep.subr.bf16.mxu1 %v4101_v45  ;;  %v4167_v33 = vld [vmem:[#allocation7 + $0x63c] ss:$24 sps:$4 sm:$0xff]   ;;  %v4150_v45 = vld [vmem:[#allocation7 + $0x720] ss:$24 sps:$4 sm:$0xff]  }
  0xc9   :  { %1969 = vmatprep.subr.bf16.mxu0 %v4061_v37  ;;  %v4165_v37 = vld [vmem:[#allocation7 + $0x638] ss:$24 sps:$4 sm:$0xff]  }
  0xcb   :  { %2091 = vmatpush1.bf16.msra.mxu1 %v4099_v49  ;;  %v4158_v49 = vld [vmem:[#allocation7 + $0x754] ss:$24 sps:$4 sm:$0xff]  }
  0xcc   :  { %1970 = vmatpush1.bf16.msra.mxu0 %v4059_v39  ;;  %2092 = vmatprep.subr.bf16.mxu1 %v4107_v50  ;;  %v4173_v39 = vld [vmem:[#allocation7 + $0x66c] ss:$24 sps:$4 sm:$0xff]   ;;  %v4156_v50 = vld [vmem:[#allocation7 + $0x750] ss:$24 sps:$4 sm:$0xff]  }
  0xcd   :  { %1971 = vmatprep.subr.bf16.mxu0 %v4068_v42  ;;  %v4171_v42 = vld [vmem:[#allocation7 + $0x668] ss:$24 sps:$4 sm:$0xff]  }
  0xcf   :  { %2093 = vmatpush1.bf16.msra.mxu1 %v4105_v53  ;;  %v4164_v53 = vld [vmem:[#allocation7 + $0x784] ss:$24 sps:$4 sm:$0xff]  }
  0xd0   :  { %1972 = vmatpush1.bf16.msra.mxu0 %v4066_v43  ;;  %2094 = vmatprep.subr.bf16.mxu1 %v4113_v54  ;;  %v4179_v43 = vld [vmem:[#allocation7 + $0x69c] ss:$24 sps:$4 sm:$0xff]   ;;  %v4162_v54 = vld [vmem:[#allocation7 + $0x780] ss:$24 sps:$4 sm:$0xff]  }
  0xd1   :  { %1973 = vmatprep.subr.bf16.mxu0 %v4074_v47  ;;  %v4177_v47 = vld [vmem:[#allocation7 + $0x698] ss:$24 sps:$4 sm:$0xff]  }
  0xd3   :  { %2095 = vmatpush1.bf16.msra.mxu1 %v4111_v57  ;;  %v4170_v57 = vld [vmem:[#allocation7 + $0x7b4] ss:$24 sps:$4 sm:$0xff]  }
  0xd4   :  { %1974 = vmatpush1.bf16.msra.mxu0 %v4072_v48  ;;  %2096 = vmatprep.subr.bf16.mxu1 %v4119_v58  ;;  %v4185_v48 = vld [vmem:[#allocation7 + $0x6cc] ss:$24 sps:$4 sm:$0xff]   ;;  %v4195_v58 = vld [vmem:[#allocation7 + $0x728] ss:$24 sps:$4 sm:$0xff]  }
  0xd5   :  { %1975 = vmatprep.subr.bf16.mxu0 %v4080_v51  ;;  %v4183_v51 = vld [vmem:[#allocation7 + $0x6c8] ss:$24 sps:$4 sm:$0xff]  }
  0xd7   :  { %2097 = vmatpush1.bf16.msra.mxu1 %v4117_v61  ;;  %v4176_v61 = vld [vmem:[#allocation7 + $0x7e4] ss:$24 sps:$4 sm:$0xff]  }
  0xd8   :  { %1976 = vmatpush1.bf16.msra.mxu0 %v4078_v52  ;;  %2098 = vmatprep.subr.bf16.mxu1 %v4125_v62  ;;  %v4191_v52 = vld [vmem:[#allocation7 + $0x6fc] ss:$24 sps:$4 sm:$0xff]   ;;  %v4201_v62 = vld [vmem:[#allocation7 + $0x758] ss:$24 sps:$4 sm:$0xff]  }
  0xd9   :  { %1977 = vmatprep.subr.bf16.mxu0 %v4086_v55  ;;  %v4189_v55 = vld [vmem:[#allocation7 + $0x6f8] ss:$24 sps:$4 sm:$0xff]  }
  0xdb   :  { %2099 = vmatpush1.bf16.msra.mxu1 %v4123_v1  ;;  %v4182_v1 = vld [vmem:[#allocation7 + $0x814] ss:$24 sps:$4 sm:$0xff]  }
  0xdc   :  { %1978 = vmatpush1.bf16.msra.mxu0 %v4084_v56  ;;  %2100 = vmatprep.subr.bf16.mxu1 %v4131_v2  ;;  %v4197_v56 = vld [vmem:[#allocation7 + $0x72c] ss:$24 sps:$4 sm:$0xff]   ;;  %v4208_v2 = vld [vmem:[#allocation7 + $0x788] ss:$24 sps:$4 sm:$0xff]  }
  0xdd   :  { %1979 = vmatprep.subr.bf16.mxu0 %v4092_v59  ;;  %v4168_v59 = vld [vmem:[#allocation7 + $0x7b0] ss:$24 sps:$4 sm:$0xff]  }
  0xdf   :  { %2101 = vmatpush1.bf16.msra.mxu1 %v4129_v6  ;;  %v4214_v6 = vld [vmem:[#allocation7 + $0x7b8] ss:$24 sps:$4 sm:$0xff]  }
  0xe0   :  { %1980 = vmatpush1.bf16.msra.mxu0 %v4090_v60  ;;  %2102 = vmatprep.subr.bf16.mxu1 %v4137_v8  ;;  %v4203_v60 = vld [vmem:[#allocation7 + $0x75c] ss:$24 sps:$4 sm:$0xff]   ;;  %v4186_v8 = vld [vmem:[#allocation7 + $0x840] ss:$24 sps:$4 sm:$0xff]  }
  0xe1   :  { %1981 = vmatprep.subr.bf16.mxu0 %v4098_v63  ;;  %v4174_v63 = vld [vmem:[#allocation7 + $0x7e0] ss:$24 sps:$4 sm:$0xff]  }
  0xe3   :  { %2103 = vmatpush1.bf16.msra.mxu1 %v4135_v13  ;;  %v4220_v13 = vld [vmem:[#allocation7 + $0x7e8] ss:$24 sps:$4 sm:$0xff]  }
  0xe4   :  { %1982 = vmatpush1.bf16.msra.mxu0 %v4096_v0  ;;  %2104 = vmatprep.subr.bf16.mxu1 %v4143_v14  ;;  %v4210_v0 = vld [vmem:[#allocation7 + $0x78c] ss:$24 sps:$4 sm:$0xff]   ;;  %v4192_v14 = vld [vmem:[#allocation7 + $0x870] ss:$24 sps:$4 sm:$0xff]  }
  0xe5   :  { %1983 = vmatprep.subr.bf16.mxu0 %v4104_v3  ;;  %v4180_v3 = vld [vmem:[#allocation7 + $0x810] ss:$24 sps:$4 sm:$0xff]  }
  0xe7   :  { %2105 = vmatpush1.bf16.msra.mxu1 %v4141_v18  ;;  %v4198_v18 = vld [vmem:[#allocation7 + $0x8a0] ss:$24 sps:$4 sm:$0xff]  }
  0xe8   :  { %1984 = vmatpush1.bf16.msra.mxu0 %v4102_v5  ;;  %2106 = vmatprep.subr.bf16.mxu1 %v4149_v19  ;;  %v4188_v5 = vld [vmem:[#allocation7 + $0x844] ss:$24 sps:$4 sm:$0xff]  }
  0xe9   :  { %1985 = vmatprep.subr.bf16.mxu0 %v4110_v9  ;;  %v4222_v9 = vld [vmem:[#allocation7 + $0x7ec] ss:$24 sps:$4 sm:$0xff]  }
  0xea   :  { %v4234_v19 = vld [vmem:[#allocation7 + $0x84c] ss:$24 sps:$4 sm:$0xff]  }
  0xeb   :  { %2107 = vmatpush1.bf16.msra.mxu1 %v4147_v23  ;;  %v4204_v23 = vld [vmem:[#allocation7 + $0x8d0] ss:$24 sps:$4 sm:$0xff]  }
  0xec   :  { %1986 = vmatpush1.bf16.msra.mxu0 %v4108_v12  ;;  %2108 = vmatprep.subr.bf16.mxu1 %v4155_v24  ;;  %v4194_v12 = vld [vmem:[#allocation7 + $0x874] ss:$24 sps:$4 sm:$0xff]  }
  0xed   :  { %1996 = vmatprep.subr.bf16.mxu0 %v4116_v15  ;;  %v4228_v15 = vld [vmem:[#allocation7 + $0x81c] ss:$24 sps:$4 sm:$0xff]  }
  0xee   :  { %v4240_v24 = vld [vmem:[#allocation7 + $0x87c] ss:$24 sps:$4 sm:$0xff]  }
  0xef   :  { %1988 = vmatmul.mubr.bf16.vlgmr.msra.gmra.mrb[0].mxu0 %v4809_v17  ;;  %2109 = vmatpush1.bf16.msra.mxu1 %v4153_v27  ;;  %v4820_v27 = vrot.slane %v4803_v10, %v4778_v34  ;;  %v4217_v10 = vld [vmem:[#allocation7 + $0x40] ss:$24 sps:$4 sm:$0xff]  }
  0xf0   :  { %1997 = vmatpush1.bf16.msra.mxu0 %v4114_v16  ;;  %2028 = vmatprep.mubr.bf16.mxu0 %v4812_v21  ;;  %v4226_v16 = vld [vmem:[#allocation7 + $0x818] ss:$24 sps:$4 sm:$0xff]  }
  0xf1   :  { %1998 = vmatprep.subr.bf16.mxu0 %v4122_v20  ;;  %2119 = vmatprep.subr.bf16.mxu1 %v4161_v28  ;;  %v4206_v20 = vld [vmem:[#allocation7 + $0x8d4] ss:$24 sps:$4 sm:$0xff]   ;;  %v4211_v28 = vld [vmem:[#allocation7 + $0x10] ss:$24 sps:$4 sm:$0xff]  }
  0xf2   :  { %2111 = vmatmul.mubr.bf16.vlgmr.msra.gmra.mrb[0].mxu1 %v4809_v17 }
  0xf3   :  { %2120 = vmatpush1.bf16.msra.mxu1 %v4159_v32  ;;  %2151 = vmatprep.mubr.bf16.mxu1 %v4812_v21  ;;  %v4219_v32 = vld [vmem:[#allocation7 + $0x44] ss:$24 sps:$4 sm:$0xff]  }
  0xf4   :  { %1999 = vmatpush1.bf16.msra.mxu0 %v4120_v22  ;;  %2121 = vmatprep.subr.bf16.mxu1 %v4167_v33  ;;  %v4232_v22 = vld [vmem:[#allocation7 + $0x848] ss:$24 sps:$4 sm:$0xff]  }
  0xf5   :  { %2000 = vmatprep.subr.bf16.mxu0 %v4128_v25  ;;  %v4213_v25 = vld [vmem:[#allocation7 + $0x14] ss:$24 sps:$4 sm:$0xff]   ;;  %v4244_v33 = vld [vmem:[#allocation7 + $0x8a8] ss:$24 sps:$4 sm:$0xff]  }
  0xf7   :  { %2122 = vmatpush1.bf16.msra.mxu1 %v4165_v37  ;;  %v4225_v37 = vld [vmem:[#allocation7 + $0x74] ss:$24 sps:$4 sm:$0xff]  }
  0xf8   :  { %2001 = vmatpush1.bf16.msra.mxu0 %v4126_v26  ;;  %2123 = vmatprep.subr.bf16.mxu1 %v4173_v39  ;;  %v4238_v26 = vld [vmem:[#allocation7 + $0x878] ss:$24 sps:$4 sm:$0xff]  }
  0xf9   :  { %2002 = vmatprep.subr.bf16.mxu0 %v4134_v30  ;;  %v4246_v30 = vld [vmem:[#allocation7 + $0x8ac] ss:$24 sps:$4 sm:$0xff]   ;;  %v4250_v39 = vld [vmem:[#allocation7 + $0x8d8] ss:$24 sps:$4 sm:$0xff]  }
  0xfb   :  { %2124 = vmatpush1.bf16.msra.mxu1 %v4171_v42  ;;  %v4310_v42 = vld [vmem:[#allocation10 + $0x40] sm:$0xff]  }
  0xfc   :  { %2003 = vmatpush1.bf16.msra.mxu0 %v4132_v31  ;;  %2125 = vmatprep.subr.bf16.mxu1 %v4179_v43  ;;  %v4822_v31 = vld [vmem:[#allocation2] sm:$0x3f]  ;;  %v4231_v43 = vld [vmem:[#allocation7 + $0xa4] ss:$24 sps:$4 sm:$0xff]  }
  0xfd   :  { %2004 = vmatprep.subr.bf16.mxu0 %v4140_v35  ;;  %v4827_v35 = vrot.slane %v4822_v31, %v4778_v34 }
  0xff   :  { %2126 = vmatpush1.bf16.msra.mxu1 %v4177_v47  ;;  %v4229_v47 = vld [vmem:[#allocation7 + $0xa0] ss:$24 sps:$4 sm:$0xff]  }
 0x100   :  { %2005 = vmatpush1.bf16.msra.mxu0 %v4138_v36  ;;  %2127 = vmatprep.subr.bf16.mxu1 %v4185_v48  ;;  %v4252_v36 = vld [vmem:[#allocation7 + $0x8dc] ss:$24 sps:$4 sm:$0xff]  }
 0x101   :  { %2006 = vmatprep.subr.bf16.mxu0 %v4146_v40  ;;  %v2312_v40 = vcombine.high %v4827_v35, %v4827_v35  ;;  %v4237_v48 = vld [vmem:[#allocation7 + $0xd4] ss:$24 sps:$4 sm:$0xff]  }
 0x103   :  { %2128 = vmatpush1.bf16.msra.mxu1 %v4183_v51  ;;  %v4320_v51 = vld [vmem:[#allocation10 + $0x50] sm:$0xff]  }
 0x104   :  { %2007 = vmatpush1.bf16.msra.mxu0 %v4144_v41  ;;  %2129 = vmatprep.subr.bf16.mxu1 %v4191_v52  ;;  %v4223_v41 = vld [vmem:[#allocation7 + $0x70] ss:$24 sps:$4 sm:$0xff]   ;;  %v4243_v52 = vld [vmem:[#allocation7 + $0x104] ss:$24 sps:$4 sm:$0xff]  }
 0x105   :  { %2008 = vmatprep.subr.bf16.mxu0 %v4152_v44  ;;  %v4311_v44 = vld [vmem:[#allocation10] sm:$0xff]  }
 0x107   :  { %2130 = vmatpush1.bf16.msra.mxu1 %v4189_v55  ;;  %v4325_v55 = vld [vmem:[#allocation10 + $0x58] sm:$0xff]  }
 0x108   :  { %2009 = vmatpush1.bf16.msra.mxu0 %v4150_v45  ;;  %2131 = vmatprep.subr.bf16.mxu1 %v4197_v56  ;;  %v4833_v45 = vrot.slane %v2312_v40, %v4778_v34  ;;  %v4249_v56 = vld [vmem:[#allocation7 + $0x134] ss:$24 sps:$4 sm:$0xff]   ;;  %v4277_v40 = vld [vmem:[#allocation7 + $0x2e0] ss:$24 sps:$4 sm:$0xff]  }
 0x109   :  { %2010 = vmatprep.subr.bf16.mxu0 %v4158_v49  ;;  %v4316_v49 = vld [vmem:[#allocation10 + $0x8] sm:$0xff]  }
 0x10b   :  { %2132 = vmatpush1.bf16.msra.mxu1 %v4195_v58  ;;  %v4247_v58 = vld [vmem:[#allocation7 + $0x130] ss:$24 sps:$4 sm:$0xff]  }
 0x10c   :  { %2011 = vmatpush1.bf16.msra.mxu0 %v4156_v50  ;;  %2133 = vmatprep.subr.bf16.mxu1 %v4203_v60  ;;  %v4235_v50 = vld [vmem:[#allocation7 + $0xd0] ss:$24 sps:$4 sm:$0xff]   ;;  %v4255_v60 = vld [vmem:[#allocation7 + $0x164] ss:$24 sps:$4 sm:$0xff]  }
 0x10d   :  { %2012 = vmatprep.subr.bf16.mxu0 %v4164_v53  ;;  %v4321_v53 = vld [vmem:[#allocation10 + $0x10] sm:$0xff]  }
 0x10f   :  { %2134 = vmatpush1.bf16.msra.mxu1 %v4201_v62  ;;  %v4253_v62 = vld [vmem:[#allocation7 + $0x160] ss:$24 sps:$4 sm:$0xff]  }
 0x110   :  { %2013 = vmatpush1.bf16.msra.mxu0 %v4162_v54  ;;  %2135 = vmatprep.subr.bf16.mxu1 %v4210_v0  ;;  %v4241_v54 = vld [vmem:[#allocation7 + $0x100] ss:$24 sps:$4 sm:$0xff]   ;;  %v4258_v0 = vld [vmem:[#allocation7 + $0x194] ss:$24 sps:$4 sm:$0xff]  }
 0x111   :  { %2014 = vmatprep.subr.bf16.mxu0 %v4170_v57  ;;  %v4326_v57 = vld [vmem:[#allocation10 + $0x18] sm:$0xff]  }
 0x113   :  { %2136 = vmatpush1.bf16.msra.mxu1 %v4208_v2  ;;  %v4256_v2 = vld [vmem:[#allocation7 + $0x190] ss:$24 sps:$4 sm:$0xff]  }
 0x114   :  { %2015 = vmatpush1.bf16.msra.mxu0 %v4168_v59  ;;  %2137 = vmatprep.subr.bf16.mxu1 %v4216_v4  ;;  %v4330_v59 = vld [vmem:[#allocation10 + $0x60] sm:$0xff]  }
 0x115   :  { %2016 = vmatprep.subr.bf16.mxu0 %v4176_v61  ;;  %v4331_v61 = vld [vmem:[#allocation10 + $0x20] sm:$0xff]  }
 0x116   :  { %v4261_v4 = vld [vmem:[#allocation7 + $0x1c4] ss:$24 sps:$4 sm:$0xff]  }
 0x117   :  { %2138 = vmatpush1.bf16.msra.mxu1 %v4214_v6  ;;  %v4259_v6 = vld [vmem:[#allocation7 + $0x1c0] ss:$24 sps:$4 sm:$0xff]  }
 0x118   :  { %2017 = vmatpush1.bf16.msra.mxu0 %v4174_v63  ;;  %2139 = vmatprep.subr.bf16.mxu1 %v4222_v9  ;;  %v4335_v63 = vld [vmem:[#allocation10 + $0x68] sm:$0xff]  }
 0x119   :  { %2018 = vmatprep.subr.bf16.mxu0 %v4182_v1  ;;  %v4336_v1 = vld [vmem:[#allocation10 + $0x28] sm:$0xff]  }
 0x11a   :  { %v4264_v9 = vld [vmem:[#allocation7 + $0x1f4] ss:$24 sps:$4 sm:$0xff]  }
 0x11b   :  { %2140 = vmatpush1.bf16.msra.mxu1 %v4220_v13  ;;  %v4262_v13 = vld [vmem:[#allocation7 + $0x1f0] ss:$24 sps:$4 sm:$0xff]  }
 0x11c   :  { %2019 = vmatpush1.bf16.msra.mxu0 %v4180_v3  ;;  %2141 = vmatprep.subr.bf16.mxu1 %v4228_v15  ;;  %v4340_v3 = vld [vmem:[#allocation10 + $0x70] sm:$0xff]  }
 0x11d   :  { %2020 = vmatprep.subr.bf16.mxu0 %v4188_v5  ;;  %v4341_v5 = vld [vmem:[#allocation10 + $0x30] sm:$0xff]  }
 0x11e   :  { %v4267_v15 = vld [vmem:[#allocation7 + $0x224] ss:$24 sps:$4 sm:$0xff]  }
 0x11f   :  { %2142 = vmatpush1.bf16.msra.mxu1 %v4226_v16  ;;  %v4351_v16 = vld [vmem:[#allocation10 + $0x80] sm:$0xff]  }
 0x120   :  { %2021 = vmatpush1.bf16.msra.mxu0 %v4186_v8  ;;  %2143 = vmatprep.subr.bf16.mxu1 %v4234_v19  ;;  %v4345_v8 = vld [vmem:[#allocation10 + $0x78] sm:$0xff]  }
 0x121   :  { %2022 = vmatprep.subr.bf16.mxu0 %v4194_v12  ;;  %v4346_v12 = vld [vmem:[#allocation10 + $0x38] sm:$0xff]  }
 0x122   :  { %v4265_v19 = vld [vmem:[#allocation7 + $0x220] ss:$24 sps:$4 sm:$0xff]  }
 0x123   :  { %2144 = vmatpush1.bf16.msra.mxu1 %v4232_v22  ;;  %v4270_v22 = vld [vmem:[#allocation7 + $0x254] ss:$24 sps:$4 sm:$0xff]  }
 0x124   :  { %2023 = vmatpush1.bf16.msra.mxu0 %v4192_v14  ;;  %2145 = vmatprep.subr.bf16.mxu1 %v4240_v24  ;;  %v4350_v14 = vld [vmem:[#allocation10 + $0xc0] sm:$0xff]  }
 0x125   :  { %2024 = vmatprep.subr.bf16.mxu0 %v4200_v38  ;;  %v4839_v38 = vrot.slane %v4827_v35, %v4778_v34  ;;  %v4268_v24 = vld [vmem:[#allocation7 + $0x250] ss:$24 sps:$4 sm:$0xff]   ;;  %v4366_v35 = vld [vmem:[#allocation10 + $0x98] sm:$0xff]  }
 0x127   :  { %2146 = vmatpush1.bf16.msra.mxu1 %v4238_v26  ;;  %v4273_v26 = vld [vmem:[#allocation7 + $0x284] ss:$24 sps:$4 sm:$0xff]  }
 0x128   :  { %2025 = vmatpush1.bf16.msra.mxu0 %v4198_v18  ;;  %2147 = vmatprep.subr.bf16.mxu1 %v4246_v30  ;;  %v2343_v18 = vcombine.high %v4833_v45, %v4833_v45  ;;  %v4271_v30 = vld [vmem:[#allocation7 + $0x280] ss:$24 sps:$4 sm:$0xff]  }
 0x129   :  { %2026 = vmatprep.subr.bf16.mxu0 %v4206_v20  ;;  %v4355_v20 = vld [vmem:[#allocation10 + $0xc8] sm:$0xff]  }
 0x12b   :  { %2148 = vmatpush1.bf16.msra.mxu1 %v4244_v33  ;;  %v4276_v33 = vld [vmem:[#allocation7 + $0x2b4] ss:$24 sps:$4 sm:$0xff]  }
 0x12c   :  { %2027 = vmatpush1.bf16.msra.mxu0 %v4204_v23  ;;  %2149 = vmatprep.subr.bf16.mxu1 %v4252_v36  ;;  %v4356_v23 = vld [vmem:[#allocation10 + $0x88] sm:$0xff]   ;;  %v4370_v36 = vld [vmem:[#allocation10 + $0xe0] sm:$0xff]  }
 0x12d   :  { %2160 = vmatprep.subr.bf16.mxu0 %v4213_v25  ;;  %v4360_v25 = vld [vmem:[#allocation10 + $0xd0] sm:$0xff]  }
 0x12f   :  { %2029 = vmatmul.mubr.bf16.vlgmr.msra.gmra.mrb[0].mxu0 %v4820_v27  ;;  %2150 = vmatpush1.bf16.msra.mxu1 %v4250_v39  ;;  %v4371_v39 = vld [vmem:[#allocation10 + $0xa0] sm:$0xff]  }
 0x130   :  { %2161 = vmatpush1.bf16.msra.mxu0 %v4211_v28  ;;  %2192 = vmatprep.mubr.bf16.mxu0 %v4785_v46  ;;  %v4315_v46 = vld [vmem:[#allocation10 + $0x48] sm:$0xff]   ;;  %v4361_v28 = vld [vmem:[#allocation10 + $0x90] sm:$0xff]  }
 0x131   :  { %2162 = vmatprep.subr.bf16.mxu0 %v4219_v32  ;;  %3769 = vmatprep.subr.bf16.mxu1 %v4310_v42  ;;  %v4365_v32 = vld [vmem:[#allocation10 + $0xd8] sm:$0xff]   ;;  %v4282_v42 = vld [vmem:[#allocation7 + $0x314] ss:$24 sps:$4 sm:$0xff]  }
 0x132   :  { %2152 = vmatmul.mubr.bf16.vlgmr.msra.gmra.mrb[0].mxu1 %v4820_v27 }
 0x133   :  { %3770 = vmatpush3.bf16.msra.mxu1 %v4311_v44  ;;  %3157 = vmatprep.mubr.bf16.mxu1 %v4833_v45  ;;  %v4376_v44 = vld [vmem:[#allocation10 + $0xa8] sm:$0xff]   ;;  %v4285_v45 = vld [vmem:[#allocation7 + $0x344] ss:$24 sps:$4 sm:$0xff]  }
 0x134   :  { %2163 = vmatpush1.bf16.msra.mxu0 %v4217_v10  ;;  %3771 = vmatprep.subr.bf16.mxu1 %v4315_v46  ;;  %v4274_v10 = vld [vmem:[#allocation7 + $0x2b0] ss:$24 sps:$4 sm:$0xff]   ;;  %v4380_v46 = vld [vmem:[#allocation10 + $0xf0] sm:$0xff]  }
 0x135   :  { %2164 = vmatprep.subr.bf16.mxu0 %v4225_v37  ;;  %v4279_v37 = vld [vmem:[#allocation7 + $0x2e4] ss:$24 sps:$4 sm:$0xff]  }
 0x137   :  { %3772 = vmatpush3.bf16.msra.mxu1 %v4316_v49 }
 0x138   :  { %2165 = vmatpush1.bf16.msra.mxu0 %v4223_v41  ;;  %3773 = vmatprep.subr.bf16.mxu1 %v4320_v51  ;;  %v4375_v41 = vld [vmem:[#allocation10 + $0xe8] sm:$0xff]   ;;  %v4385_v51 = vld [vmem:[#allocation10 + $0xf8] sm:$0xff]  }
 0x139   :  { %2166 = vmatprep.subr.bf16.mxu0 %v4231_v43  ;;  %v4280_v43 = vld [vmem:[#allocation7 + $0x310] ss:$24 sps:$4 sm:$0xff]  }
 0x13b   :  { %3774 = vmatpush3.bf16.msra.mxu1 %v4321_v53  ;;  %v4286_v53 = vld [vmem:[#allocation7 + $0x370] ss:$24 sps:$4 sm:$0xff]  }
 0x13c   :  { %2167 = vmatpush1.bf16.msra.mxu0 %v4229_v47  ;;  %3775 = vmatprep.subr.bf16.mxu1 %v4325_v55  ;;  %v2297_v47 = vcombine.high %v4822_v31, %v4822_v31  ;;  %v4386_v31 = vld [vmem:[#allocation10 + $0xb8] sm:$0xff]  }
 0x13d   :  { %2168 = vmatprep.subr.bf16.mxu0 %v4237_v48  ;;  %v4381_v48 = vld [vmem:[#allocation10 + $0xb0] sm:$0xff]  }
 0x13e   :  { %v4848_v49 = vrot.slane %v2297_v47, %v4778_v34  ;;  %v4291_v55 = vld [vmem:[#allocation7 + $0x3a4] ss:$24 sps:$4 sm:$0xff]   ;;  %v4332_v47 = vld [vmem:[#allocation7 + $0x5b0] ss:$24 sps:$4 sm:$0xff]  }
 0x13f   :  { %3776 = vmatpush3.bf16.msra.mxu1 %v4326_v57  ;;  %v4289_v57 = vld [vmem:[#allocation7 + $0x3a0] ss:$24 sps:$4 sm:$0xff]  }
 0x140   :  { %2169 = vmatpush1.bf16.msra.mxu0 %v4235_v50  ;;  %3777 = vmatprep.subr.bf16.mxu1 %v4330_v59  ;;  %v4283_v50 = vld [vmem:[#allocation7 + $0x340] ss:$24 sps:$4 sm:$0xff]   ;;  %v4294_v59 = vld [vmem:[#allocation7 + $0x3d4] ss:$24 sps:$4 sm:$0xff]  }
 0x141   :  { %2170 = vmatprep.subr.bf16.mxu0 %v4243_v52  ;;  %v4288_v52 = vld [vmem:[#allocation7 + $0x374] ss:$24 sps:$4 sm:$0xff]  }
 0x143   :  { %3778 = vmatpush3.bf16.msra.mxu1 %v4331_v61  ;;  %v4396_v61 = vld [vmem:[#allocation10 + $0x108] sm:$0xff]  }
 0x144   :  { %2171 = vmatpush1.bf16.msra.mxu0 %v4241_v54  ;;  %3779 = vmatprep.subr.bf16.mxu1 %v4335_v63  ;;  %v4390_v54 = vld [vmem:[#allocation10 + $0x140] sm:$0xff]   ;;  %v4400_v63 = vld [vmem:[#allocation10 + $0x150] sm:$0xff]  }
 0x145   :  { %2172 = vmatprep.subr.bf16.mxu0 %v4249_v56  ;;  %v4391_v56 = vld [vmem:[#allocation10 + $0x100] sm:$0xff]  }
 0x147   :  { %3780 = vmatpush3.bf16.msra.mxu1 %v4336_v1  ;;  %v4401_v1 = vld [vmem:[#allocation10 + $0x110] sm:$0xff]  }
 0x148   :  { %2173 = vmatpush1.bf16.msra.mxu0 %v4247_v58  ;;  %3781 = vmatprep.subr.bf16.mxu1 %v4340_v3  ;;  %v4395_v58 = vld [vmem:[#allocation10 + $0x148] sm:$0xff]   ;;  %v4405_v3 = vld [vmem:[#allocation10 + $0x158] sm:$0xff]  }
 0x149   :  { %2174 = vmatprep.subr.bf16.mxu0 %v4255_v60 }
 0x14b   :  { %3782 = vmatpush3.bf16.msra.mxu1 %v4341_v5  ;;  %v4406_v5 = vld [vmem:[#allocation10 + $0x118] sm:$0xff]  }
 0x14c   :  { %2175 = vmatpush1.bf16.msra.mxu0 %v4253_v62  ;;  %3783 = vmatprep.subr.bf16.mxu1 %v4345_v8  ;;  %v4292_v62 = vld [vmem:[#allocation7 + $0x3d0] ss:$24 sps:$4 sm:$0xff]  }
 0x14d   :  { %2176 = vmatprep.subr.bf16.mxu0 %v4258_v0  ;;  %v4297_v0 = vld [vmem:[#allocation7 + $0x404] ss:$24 sps:$4 sm:$0xff]  }
 0x14e   :  { %v4410_v8 = vld [vmem:[#allocation10 + $0x160] sm:$0xff]  }
 0x14f   :  { %3784 = vmatpush3.bf16.msra.mxu1 %v4346_v12  ;;  %v4411_v12 = vld [vmem:[#allocation10 + $0x120] sm:$0xff]  }
 0x150   :  { %2177 = vmatpush1.bf16.msra.mxu0 %v4256_v2  ;;  %3791 = vmatprep.subr.bf16.mxu1 %v4350_v14  ;;  %v4295_v2 = vld [vmem:[#allocation7 + $0x400] ss:$24 sps:$4 sm:$0xff]   ;;  %v4415_v14 = vld [vmem:[#allocation10 + $0x168] sm:$0xff]  }
 0x151   :  { %2178 = vmatprep.subr.bf16.mxu0 %v4261_v4  ;;  %v4300_v4 = vld [vmem:[#allocation7 + $0x434] ss:$24 sps:$4 sm:$0xff]  }
 0x152   :  { %3158 = vmatmul.mubr.bf16.vlgmr.msra.gmra.mrb[4].mxu1 %v4839_v38 }
 0x153   :  { %3792 = vmatpush3.bf16.msra.mxu1 %v4351_v16  ;;  %3197 = vmatprep.mubr.bf16.mxu1 %v2343_v18  ;;  %v4304_v16 = vld [vmem:[#allocation7 + $0x490] ss:$24 sps:$4 sm:$0xff]   ;;  %v4420_v18 = vld [vmem:[#allocation10 + $0x170] sm:$0xff]  }
 0x154   :  { %2179 = vmatpush1.bf16.msra.mxu0 %v4259_v6  ;;  %3793 = vmatprep.subr.bf16.mxu1 %v4355_v20  ;;  %v4298_v6 = vld [vmem:[#allocation7 + $0x430] ss:$24 sps:$4 sm:$0xff]   ;;  %v4421_v20 = vld [vmem:[#allocation10 + $0x130] sm:$0xff]  }
 0x155   :  { %2180 = vmatprep.subr.bf16.mxu0 %v4264_v9  ;;  %v4303_v9 = vld [vmem:[#allocation7 + $0x464] ss:$24 sps:$4 sm:$0xff]  }
 0x157   :  { %3794 = vmatpush3.bf16.msra.mxu1 %v4356_v23  ;;  %v4422_v23 = vld [vmem:[#allocation10 + $0x178] sm:$0xff]  }
 0x158   :  { %2181 = vmatpush1.bf16.msra.mxu0 %v4262_v13  ;;  %3795 = vmatprep.subr.bf16.mxu1 %v4360_v25  ;;  %v4301_v13 = vld [vmem:[#allocation7 + $0x460] ss:$24 sps:$4 sm:$0xff]  }
 0x159   :  { %2182 = vmatprep.subr.bf16.mxu0 %v4267_v15  ;;  %v4306_v15 = vld [vmem:[#allocation7 + $0x494] ss:$24 sps:$4 sm:$0xff]   ;;  %v4423_v25 = vld [vmem:[#allocation10 + $0x138] sm:$0xff]  }
 0x15b   :  { %3796 = vmatpush3.bf16.msra.mxu1 %v4361_v28  ;;  %v4425_v28 = vld [vmem:[#allocation10 + $0x1c0] sm:$0xff]  }
 0x15c   :  { %2183 = vmatpush1.bf16.msra.mxu0 %v4265_v19  ;;  %3797 = vmatprep.subr.bf16.mxu1 %v4365_v32  ;;  %v4309_v19 = vld [vmem:[#allocation7 + $0x4c4] ss:$24 sps:$4 sm:$0xff]   ;;  %v2327_v32 = vrot.slane %v4848_v49, %v4778_v34 }
 0x15d   :  { %2184 = vmatprep.subr.bf16.mxu0 %v4270_v22  ;;  %v4307_v22 = vld [vmem:[#allocation7 + $0x4c0] ss:$24 sps:$4 sm:$0xff]  }
 0x15f   :  { %3798 = vmatpush3.bf16.msra.mxu1 %v4366_v35  ;;  %v4317_v35 = vld [vmem:[#allocation7 + $0x520] ss:$24 sps:$4 sm:$0xff]  }
 0x160   :  { %2185 = vmatpush1.bf16.msra.mxu0 %v4268_v24  ;;  %3799 = vmatprep.subr.bf16.mxu1 %v4370_v36  ;;  %v4314_v24 = vld [vmem:[#allocation7 + $0x4f4] ss:$24 sps:$4 sm:$0xff]  }
 0x161   :  { %2186 = vmatprep.subr.bf16.mxu0 %v4273_v26  ;;  %v4312_v26 = vld [vmem:[#allocation7 + $0x4f0] ss:$24 sps:$4 sm:$0xff]   ;;  %v4324_v36 = vld [vmem:[#allocation7 + $0x554] ss:$24 sps:$4 sm:$0xff]  }
 0x163   :  { %3800 = vmatpush3.bf16.msra.mxu1 %v4371_v39  ;;  %v4322_v39 = vld [vmem:[#allocation7 + $0x550] ss:$24 sps:$4 sm:$0xff]  }
 0x164   :  { %2187 = vmatpush1.bf16.msra.mxu0 %v4271_v30  ;;  %3801 = vmatprep.subr.bf16.mxu1 %v4375_v41  ;;  %v4319_v30 = vld [vmem:[#allocation7 + $0x524] ss:$24 sps:$4 sm:$0xff]  }
 0x165   :  { %2188 = vmatprep.subr.bf16.mxu0 %v4276_v33  ;;  %v4426_v33 = vld [vmem:[#allocation10 + $0x180] sm:$0xff]  }
 0x166   :  { %v4329_v41 = vld [vmem:[#allocation7 + $0x584] ss:$24 sps:$4 sm:$0xff]  }
 0x167   :  { %3802 = vmatpush3.bf16.msra.mxu1 %v4376_v44  ;;  %v4334_v44 = vld [vmem:[#allocation7 + $0x5b4] ss:$24 sps:$4 sm:$0xff]  }
 0x168   :  { %2189 = vmatpush1.bf16.msra.mxu0 %v4274_v10  ;;  %3803 = vmatprep.subr.bf16.mxu1 %v4380_v46  ;;  %v4427_v10 = vld [vmem:[#allocation10 + $0x1c8] sm:$0xff]   ;;  %v4433_v46 = vld [vmem:[#allocation10 + $0x1e0] sm:$0xff]  }
 0x169   :  { %2190 = vmatprep.subr.bf16.mxu0 %v4279_v37  ;;  %v4428_v37 = vld [vmem:[#allocation10 + $0x188] sm:$0xff]  }
 0x16b   :  { %3804 = vmatpush3.bf16.msra.mxu1 %v4381_v48  ;;  %v4339_v48 = vld [vmem:[#allocation7 + $0x5e4] ss:$24 sps:$4 sm:$0xff]  }
 0x16c   :  { %2191 = vmatpush1.bf16.msra.mxu0 %v4277_v40  ;;  %3805 = vmatprep.subr.bf16.mxu1 %v4385_v51  ;;  %v4429_v40 = vld [vmem:[#allocation10 + $0x1d0] sm:$0xff]   ;;  %v4435_v51 = vld [vmem:[#allocation10 + $0x1e8] sm:$0xff]  }
 0x16d   :  { %2201 = vmatprep.subr.bf16.mxu0 %v4282_v42  ;;  %v4430_v42 = vld [vmem:[#allocation10 + $0x190] sm:$0xff]  }
 0x16f   :  { %2193 = vmatmul.mubr.bf16.vlgmr.msra.gmra.mrb[4].mxu0 %v4790_v7  ;;  %v2313_v7 = vcombine.high %v4848_v49, %v4848_v49  ;;  %3806 = vmatpush3.bf16.msra.mxu1 %v4386_v31  ;;  %v4434_v49 = vld [vmem:[#allocation10 + $0x1a0] sm:$0xff]   ;;  %v4436_v31 = vld [vmem:[#allocation10 + $0x1a8] sm:$0xff]  }
 0x170   :  { %2202 = vmatpush1.bf16.msra.mxu0 %v4280_v43  ;;  %2233 = vmatprep.mubr.bf16.mxu0 %v4794_v11  ;;  %v2342_v11 = vcombine.high %v4839_v38, %v4839_v38  ;;  %v4416_v38 = vld [vmem:[#allocation10 + $0x128] sm:$0xff]   ;;  %v4431_v43 = vld [vmem:[#allocation10 + $0x1d8] sm:$0xff]  }
 0x171   :  { %2203 = vmatprep.subr.bf16.mxu0 %v4285_v45  ;;  %v2341_v60 = vrot.slane %v2313_v7, %v4778_v34  ;;  %3813 = vmatprep.subr.bf16.mxu1 %v4390_v54  ;;  %v4327_v34 = vld [vmem:[#allocation7 + $0x580] ss:$24 sps:$4 sm:$0xff]   ;;  %v4349_v54 = vld [vmem:[#allocation7 + $0x644] ss:$24 sps:$4 sm:$0xff]  }
 0x172   :  { %3198 = vmatmul.mubr.bf16.vlgmr.msra.gmra.mrb[8].mxu1 %v2342_v11  ;;  %v4432_v45 = vld [vmem:[#allocation10 + $0x198] sm:$0xff]   ;;  %v4438_v7 = vld [vmem:[#allocation10 + $0x1b0] sm:$0xff]  }
 0x173   :  { %3814 = vmatpush3.bf16.msra.mxu1 %v4391_v56  ;;  %3237 = vmatprep.mubr.bf16.mxu1 %v2341_v60  ;;  %v4347_v56 = vld [vmem:[#allocation7 + $0x640] ss:$24 sps:$4 sm:$0xff]   ;;  %v4354_v11 = vld [vmem:[#allocation7 + $0x674] ss:$24 sps:$4 sm:$0xff]  }
 0x174   :  { %2204 = vmatpush1.bf16.msra.mxu0 %v4283_v50  ;;  %3815 = vmatprep.subr.bf16.mxu1 %v4395_v58  ;;  %v4337_v50 = vld [vmem:[#allocation7 + $0x5e0] ss:$24 sps:$4 sm:$0xff]   ;;  %v4441_v60 = vld [vmem:[#allocation10 + $0x240] sm:$0xff]  }
 0x175   :  { %2205 = vmatprep.subr.bf16.mxu0 %v4288_v52  ;;  %v4344_v52 = vld [vmem:[#allocation7 + $0x614] ss:$24 sps:$4 sm:$0xff]   ;;  %v4440_v58 = vld [vmem:[#allocation10 + $0x1b8] sm:$0xff]  }
 0x177   :  { %3816 = vmatpush3.bf16.msra.mxu1 %v4396_v61  ;;  %v4359_v61 = vld [vmem:[#allocation7 + $0x6a4] ss:$24 sps:$4 sm:$0xff]  }
 0x178   :  { %2206 = vmatpush1.bf16.msra.mxu0 %v4286_v53  ;;  %3817 = vmatprep.subr.bf16.mxu1 %v4400_v63  ;;  %v4342_v53 = vld [vmem:[#allocation7 + $0x610] ss:$24 sps:$4 sm:$0xff]   ;;  %v4369_v63 = vld [vmem:[#allocation7 + $0x704] ss:$24 sps:$4 sm:$0xff]  }
 0x179   :  { %2207 = vmatprep.subr.bf16.mxu0 %v4291_v55  ;;  %v4437_v55 = vld [vmem:[#allocation10 + $0x1f0] sm:$0xff]  }
 0x17b   :  { %3818 = vmatpush3.bf16.msra.mxu1 %v4401_v1  ;;  %v4374_v1 = vld [vmem:[#allocation7 + $0x734] ss:$24 sps:$4 sm:$0xff]  }
 0x17c   :  { %2208 = vmatpush1.bf16.msra.mxu0 %v4289_v57  ;;  %3819 = vmatprep.subr.bf16.mxu1 %v4405_v3  ;;  %v4439_v57 = vld [vmem:[#allocation10 + $0x1f8] sm:$0xff]  }
 0x17d   :  { %2209 = vmatprep.subr.bf16.mxu0 %v4294_v59  ;;  %v4352_v59 = vld [vmem:[#allocation7 + $0x670] ss:$24 sps:$4 sm:$0xff]   ;;  %v4379_v3 = vld [vmem:[#allocation7 + $0x764] ss:$24 sps:$4 sm:$0xff]  }
 0x17f   :  { %3820 = vmatpush3.bf16.msra.mxu1 %v4406_v5  ;;  %v4384_v5 = vld [vmem:[#allocation7 + $0x794] ss:$24 sps:$4 sm:$0xff]  }
 0x180   :  { %2210 = vmatpush1.bf16.msra.mxu0 %v4292_v62  ;;  %3821 = vmatprep.subr.bf16.mxu1 %v4410_v8  ;;  %v4364_v62 = vld [vmem:[#allocation7 + $0x6d4] ss:$24 sps:$4 sm:$0xff]   ;;  %v4389_v8 = vld [vmem:[#allocation7 + $0x7c4] ss:$24 sps:$4 sm:$0xff]  }
 0x181   :  { %2211 = vmatprep.subr.bf16.mxu0 %v4297_v0  ;;  %v4367_v0 = vld [vmem:[#allocation7 + $0x700] ss:$24 sps:$4 sm:$0xff]  }
 0x183   :  { %3822 = vmatpush3.bf16.msra.mxu1 %v4411_v12  ;;  %v4394_v12 = vld [vmem:[#allocation7 + $0x7f4] ss:$24 sps:$4 sm:$0xff]  }
 0x184   :  { %2212 = vmatpush1.bf16.msra.mxu0 %v4295_v2  ;;  %3823 = vmatprep.subr.bf16.mxu1 %v4415_v14  ;;  %v4372_v2 = vld [vmem:[#allocation7 + $0x730] ss:$24 sps:$4 sm:$0xff]   ;;  %v4399_v14 = vld [vmem:[#allocation7 + $0x824] ss:$24 sps:$4 sm:$0xff]  }
 0x185   :  { %2213 = vmatprep.subr.bf16.mxu0 %v4300_v4  ;;  %v4377_v4 = vld [vmem:[#allocation7 + $0x760] ss:$24 sps:$4 sm:$0xff]  }
 0x187   :  { %3824 = vmatpush3.bf16.msra.mxu1 %v4416_v38  ;;  %v4404_v38 = vld [vmem:[#allocation7 + $0x854] ss:$24 sps:$4 sm:$0xff]  }
 0x188   :  { %2214 = vmatpush1.bf16.msra.mxu0 %v4298_v6  ;;  %3825 = vmatprep.subr.bf16.mxu1 %v4420_v18  ;;  %v4382_v6 = vld [vmem:[#allocation7 + $0x790] ss:$24 sps:$4 sm:$0xff]   ;;  %v4409_v18 = vld [vmem:[#allocation7 + $0x884] ss:$24 sps:$4 sm:$0xff]  }
 0x189   :  { %2215 = vmatprep.subr.bf16.mxu0 %v4303_v9  ;;  %v4387_v9 = vld [vmem:[#allocation7 + $0x7c0] ss:$24 sps:$4 sm:$0xff]  }
 0x18b   :  { %3826 = vmatpush3.bf16.msra.mxu1 %v4421_v20  ;;  %v4414_v20 = vld [vmem:[#allocation7 + $0x8b4] ss:$24 sps:$4 sm:$0xff]  }
 0x18c   :  { %2216 = vmatpush1.bf16.msra.mxu0 %v4301_v13  ;;  %3827 = vmatprep.subr.bf16.mxu1 %v4422_v23  ;;  %v4392_v13 = vld [vmem:[#allocation7 + $0x7f0] ss:$24 sps:$4 sm:$0xff]   ;;  %v4419_v23 = vld [vmem:[#allocation7 + $0x8e4] ss:$24 sps:$4 sm:$0xff]  }
 0x18d   :  { %2217 = vmatprep.subr.bf16.mxu0 %v4306_v15  ;;  %v4397_v15 = vld [vmem:[#allocation7 + $0x820] ss:$24 sps:$4 sm:$0xff]  }
 0x18f   :  { %3828 = vmatpush3.bf16.msra.mxu1 %v4423_v25  ;;  %v392_v25 = vsub.s32 0, %v4775_v29 }
 0x190   :  { %2218 = vmatpush1.bf16.msra.mxu0 %v4304_v16  ;;  %3835 = vmatprep.subr.bf16.mxu1 %v4425_v28  ;;  %v4402_v16 = vld [vmem:[#allocation7 + $0x850] ss:$24 sps:$4 sm:$0xff]   ;;  %v396_v28 = vsub.s32 1, %v4775_v29 }
 0x191   :  { %2219 = vmatprep.subr.bf16.mxu0 %v4309_v19  ;;  %v4407_v19 = vld [vmem:[#allocation7 + $0x880] ss:$24 sps:$4 sm:$0xff]  }
 0x192   :  { %3238 = vmatmul.mubr.bf16.vlgmr.msra.gmra.mrb[12].mxu1 %v2327_v32 }
 0x193   :  { %3836 = vmatpush3.bf16.msra.mxu1 %v4426_v33 }
 0x194   :  { %2220 = vmatpush1.bf16.msra.mxu0 %v4307_v22  ;;  %3837 = vmatprep.subr.bf16.mxu1 %v4427_v10  ;;  %v4412_v22 = vld [vmem:[#allocation7 + $0x8b0] ss:$24 sps:$4 sm:$0xff]  }
 0x195   :  { %2221 = vmatprep.subr.bf16.mxu0 %v4314_v24  ;;  %v4417_v24 = vld [vmem:[#allocation7 + $0x8e0] ss:$24 sps:$4 sm:$0xff]  }
 0x197   :  { %3838 = vmatpush3.bf16.msra.mxu1 %v4428_v37 }
 0x198   :  { %2222 = vmatpush1.bf16.msra.mxu0 %v4312_v26  ;;  %3839 = vmatprep.subr.bf16.mxu1 %v4429_v40  ;;  %v4862_v26 = vld [vmem:[#allocation8] sm:$0x3f] }
 0x199   :  { %2223 = vmatprep.subr.bf16.mxu0 %v4319_v30  ;;  %v393_v30 = vrot.slane %v4862_v26, %v392_v25  ;;  %v397_v32 = vrot.slane %v4862_v26, %v396_v28 }
 0x19b   :  { %3840 = vmatpush3.bf16.msra.mxu1 %v4430_v42 }
 0x19c   :  { %2224 = vmatpush1.bf16.msra.mxu0 %v4317_v35  ;;  %3841 = vmatprep.subr.bf16.mxu1 %v4431_v43 }
 0x19d   :  { %2225 = vmatprep.subr.bf16.mxu0 %v4324_v36 }
 0x19f   :  { %3842 = vmatpush3.bf16.msra.mxu1 %v4432_v45 }
 0x1a0   :  { %2226 = vmatpush1.bf16.msra.mxu0 %v4322_v39  ;;  %3843 = vmatprep.subr.bf16.mxu1 %v4433_v46 }
 0x1a1   :  { %2227 = vmatprep.subr.bf16.mxu0 %v4329_v41 }
 0x1a3   :  { %3844 = vmatpush3.bf16.msra.mxu1 %v4434_v49 }
 0x1a4   :  { %2228 = vmatpush1.bf16.msra.mxu0 %v4327_v34  ;;  %3845 = vmatprep.subr.bf16.mxu1 %v4435_v51  ;;  %v4444_v51 = vld [vmem:[#allocation10 + $0x208] sm:$0xff]  }
 0x1a5   :  { %2229 = vmatprep.subr.bf16.mxu0 %v4334_v44 }
 0x1a7   :  { %3846 = vmatpush3.bf16.msra.mxu1 %v4436_v31  ;;  %v400_v31 = vsub.s32 2, %v4775_v29 }
 0x1a8   :  { %2230 = vmatpush1.bf16.msra.mxu0 %v4332_v47  ;;  %3847 = vmatprep.subr.bf16.mxu1 %v4437_v55 }
 0x1a9   :  { %2231 = vmatprep.subr.bf16.mxu0 %v4339_v48  ;;  %v4442_v48 = vld [vmem:[#allocation10 + $0x200] sm:$0xff]  }
 0x1ab   :  { %3848 = vmatpush3.bf16.msra.mxu1 %v4438_v7  ;;  %v401_v7 = vrot.slane %v4862_v26, %v400_v31 }
 0x1ac   :  { %2232 = vmatpush1.bf16.msra.mxu0 %v4337_v50  ;;  %3849 = vmatprep.subr.bf16.mxu1 %v4439_v57  ;;  %v4443_v50 = vld [vmem:[#allocation10 + $0x248] sm:$0xff]   ;;  %v4448_v57 = vld [vmem:[#allocation10 + $0x218] sm:$0xff]  }
 0x1ad   :  { %2242 = vmatprep.subr.bf16.mxu0 %v4344_v52  ;;  %v4445_v52 = vld [vmem:[#allocation10 + $0x250] sm:$0xff]  }
 0x1af   :  { %2234 = vmatmul.mubr.bf16.vlgmr.msra.gmra.mrb[4].mxu0 %v4809_v17  ;;  %3850 = vmatpush3.bf16.msra.mxu1 %v4440_v58  ;;  %v4357_v17 = vld [vmem:[#allocation7 + $0x6a0] ss:$24 sps:$4 sm:$0xff]  }
 0x1b0   :  { %2243 = vmatpush1.bf16.msra.mxu0 %v4342_v53  ;;  %2274 = vmatprep.mubr.bf16.mxu0 %v4812_v21  ;;  %v4362_v21 = vld [vmem:[#allocation7 + $0x6d0] ss:$24 sps:$4 sm:$0xff]   ;;  %v4446_v53 = vld [vmem:[#allocation10 + $0x210] sm:$0xff]  }
 0x1b1   :  { %2244 = vmatprep.subr.bf16.mxu0 %v4349_v54  ;;  %3857 = vmatprep.subr.bf16.mxu1 %v4441_v60  ;;  %v4447_v54 = vld [vmem:[#allocation10 + $0x258] sm:$0xff]   ;;  %v4451_v60 = vld [vmem:[#allocation10 + $0x268] sm:$0xff]  }
 0x1b4   :  { %2245 = vmatpush1.bf16.msra.mxu0 %v4347_v56 }
 0x1b5   :  { %2246 = vmatprep.subr.bf16.mxu0 %v4354_v11  ;;  %v4449_v11 = vld [vmem:[#allocation10 + $0x260] sm:$0xff]  }
 0x1b8   :  { %2247 = vmatpush1.bf16.msra.mxu0 %v4352_v59  ;;  %v4450_v59 = vld [vmem:[#allocation10 + $0x220] sm:$0xff]  }
 0x1b9   :  { %2248 = vmatprep.subr.bf16.mxu0 %v4359_v61  ;;  %v4452_v61 = vld [vmem:[#allocation10 + $0x228] sm:$0xff]  }
 0x1bc   :  { %2249 = vmatpush1.bf16.msra.mxu0 %v4357_v17  ;;  %v4453_v17 = vld [vmem:[#allocation10 + $0x270] sm:$0xff]  }
 0x1bd   :  { %2250 = vmatprep.subr.bf16.mxu0 %v4364_v62  ;;  %v4454_v62 = vld [vmem:[#allocation10 + $0x230] sm:$0xff]  }
 0x1c0   :  { %2251 = vmatpush1.bf16.msra.mxu0 %v4362_v21  ;;  %v4455_v21 = vld [vmem:[#allocation10 + $0x278] sm:$0xff]  }
 0x1c1   :  { %2252 = vmatprep.subr.bf16.mxu0 %v4369_v63 }
 0x1c4   :  { %2253 = vmatpush1.bf16.msra.mxu0 %v4367_v0  ;;  %v4456_v0 = vld [vmem:[#allocation10 + $0x238] sm:$0xff]  }
 0x1c5   :  { %2254 = vmatprep.subr.bf16.mxu0 %v4374_v1  ;;  %v4457_v1 = vld [vmem:[#allocation10 + $0x2c0] sm:$0xff]  }
 0x1c8   :  { %2255 = vmatpush1.bf16.msra.mxu0 %v4372_v2 }
 0x1c9   :  { %2256 = vmatprep.subr.bf16.mxu0 %v4379_v3  ;;  %v4458_v3 = vld [vmem:[#allocation10 + $0x280] sm:$0xff]  }
 0x1cc   :  { %2257 = vmatpush1.bf16.msra.mxu0 %v4377_v4  ;;  %v4459_v4 = vld [vmem:[#allocation10 + $0x2c8] sm:$0xff]  }
 0x1cd   :  { %2258 = vmatprep.subr.bf16.mxu0 %v4384_v5  ;;  %v4460_v5 = vld [vmem:[#allocation10 + $0x288] sm:$0xff]  }
 0x1d0   :  { %2259 = vmatpush1.bf16.msra.mxu0 %v4382_v6  ;;  %v4461_v6 = vld [vmem:[#allocation10 + $0x2d0] sm:$0xff]  }
 0x1d1   :  { %2260 = vmatprep.subr.bf16.mxu0 %v4389_v8  ;;  %v4462_v8 = vld [vmem:[#allocation10 + $0x290] sm:$0xff]  }
 0x1d4   :  { %2261 = vmatpush1.bf16.msra.mxu0 %v4387_v9  ;;  %v4463_v9 = vld [vmem:[#allocation10 + $0x2d8] sm:$0xff]  }
 0x1d5   :  { %2262 = vmatprep.subr.bf16.mxu0 %v4394_v12  ;;  %v4464_v12 = vld [vmem:[#allocation10 + $0x298] sm:$0xff]  }
 0x1d8   :  { %2263 = vmatpush1.bf16.msra.mxu0 %v4392_v13  ;;  %v4465_v13 = vld [vmem:[#allocation10 + $0x2e0] sm:$0xff]  }
 0x1d9   :  { %2264 = vmatprep.subr.bf16.mxu0 %v4399_v14  ;;  %v4466_v14 = vld [vmem:[#allocation10 + $0x2a0] sm:$0xff]  }
 0x1dc   :  { %2265 = vmatpush1.bf16.msra.mxu0 %v4397_v15  ;;  %v4467_v15 = vld [vmem:[#allocation10 + $0x2e8] sm:$0xff]  }
 0x1dd   :  { %2266 = vmatprep.subr.bf16.mxu0 %v4404_v38  ;;  %v4468_v38 = vld [vmem:[#allocation10 + $0x2a8] sm:$0xff]  }
 0x1e0   :  { %2267 = vmatpush1.bf16.msra.mxu0 %v4402_v16  ;;  %v4469_v16 = vld [vmem:[#allocation10 + $0x2f0] sm:$0xff]  }
 0x1e1   :  { %2268 = vmatprep.subr.bf16.mxu0 %v4409_v18  ;;  %v4470_v18 = vld [vmem:[#allocation10 + $0x2b0] sm:$0xff]  }
 0x1e4   :  { %2269 = vmatpush1.bf16.msra.mxu0 %v4407_v19  ;;  %v4471_v19 = vld [vmem:[#allocation10 + $0x2f8] sm:$0xff]  }
 0x1e5   :  { %2270 = vmatprep.subr.bf16.mxu0 %v4414_v20  ;;  %v4472_v20 = vld [vmem:[#allocation10 + $0x2b8] sm:$0xff]  }
 0x1e8   :  { %2271 = vmatpush1.bf16.msra.mxu0 %v4412_v22 }
 0x1e9   :  { %2272 = vmatprep.subr.bf16.mxu0 %v4419_v23  ;;  %v3672_v23 = vld [vmem:[#allocation11] ss:$0 sm:$0xff] }
 0x1ec   :  { %2273 = vmatpush1.bf16.msra.mxu0 %v4417_v24 }
 0x1ef   :  { %2275 = vmatmul.mubr.bf16.vlgmr.msra.gmra.mrb[4].mxu0 %v4820_v27  ;;  %v404_v27 = vsub.s32 3, %v4775_v29 }
 0x1f1   :  { %v405_v40 = vrot.slane %v4862_v26, %v404_v27 }
 0x202   :  { %v2030_v33 = vpop.f32.mrb[0].mxu0 }
 0x203   :  { %v3901_v35 = vadd.f32 %v2030_v33, %v393_v30  ;;  %v2032_v10 = vpop.f32.mrb[1].mxu0 }
 0x204   :  { %v3902_v36 = vadd.f32 %v2032_v10, %v397_v32  ;;  %v2034_v37 = vpop.f32.mrb[2].mxu0 }
 0x205   :  { %4473 = vtanh.f32 %v3901_v35  ;;  %v2035_v39 = vpop.f32.mrb[3].mxu0  ;;  %v2153_v41 = vpop.f32.mrb[0].mxu1 }
 0x206   :  { %4475 = vtanh.f32 %v3902_v36  ;;  %v2155_v42 = vpop.f32.mrb[1].mxu1  ;;  %v3903_v58 = vadd.f32 %v2153_v41, %v401_v7 }
 0x207   :  { %v3904_v43 = vadd.f32 %v2155_v42, %v405_v40  ;;  %v2157_v44 = vpop.f32.mrb[2].mxu1 }
 0x208   :  { %v2158_v47 = vpop.f32.mrb[3].mxu1  ;;  %v408_v44 = vsub.s32 4, %v4775_v29 }
 0x209   :  { %4477 = vtanh.f32 %v3904_v43 }
 0x20a   :  { %4479 = vtanh.f32 %v3903_v58  ;;  %v409_v47 = vrot.slane %v4862_v26, %v408_v44 }
 0x20f   :  { %v4474_v34 = vpop.eup %4473 }
 0x210   :  { %v4476_v45 = vpop.eup %4475  ;;  %v2290_v49 = vpack.c.bf16 %v4474_v34, %v4474_v34 }
 0x211   :  { %v2291_v46 = vpack.c.bf16 %v4476_v45, %v4476_v45  ;;  %v412_v45 = vsub.s32 5, %v4775_v29 }
 0x213   :  { %3277 = vmatprep.mubr.bf16.mxu1 %v2291_v46  ;;  %v4478_v55 = vpop.eup %4477  ;;  %v413_v46 = vrot.slane %v4862_v26, %v412_v45 }
 0x214   :  { %3278 = vmatmul.mubr.bf16.vlgmr.msra.gmra.mrb[16].mxu1 %v2290_v49  ;;  %v2293_v56 = vpack.c.bf16 %v4478_v55, %v4478_v55  ;;  %v4480_v63 = vpop.eup %4479 }
 0x215   :  { %3858 = vmatpush3.bf16.msra.mxu1 %v4442_v48  ;;  %v2292_v2 = vpack.c.bf16 %v4480_v63, %v4480_v63 }
 0x216   :  { %3859 = vmatprep.subr.bf16.mxu1 %v4443_v50  ;;  %3317 = vmatprep.mubr.bf16.mxu1 %v2293_v56 }
 0x219   :  { %3860 = vmatpush3.bf16.msra.mxu1 %v4444_v51 }
 0x21a   :  { %3861 = vmatprep.subr.bf16.mxu1 %v4445_v52 }
 0x21d   :  { %3862 = vmatpush3.bf16.msra.mxu1 %v4446_v53 }
 0x21e   :  { %3863 = vmatprep.subr.bf16.mxu1 %v4447_v54 }
 0x221   :  { %3864 = vmatpush3.bf16.msra.mxu1 %v4448_v57 }
 0x222   :  { %3865 = vmatprep.subr.bf16.mxu1 %v4449_v11 }
 0x225   :  { %3866 = vmatpush3.bf16.msra.mxu1 %v4450_v59  ;;  %v3785_v22 = vpop.f32.mrb[4].mxu1 }
 0x226   :  { %3867 = vmatprep.subr.bf16.mxu1 %v4451_v60  ;;  %v3786_v24 = vpop.f32.mrb[5].mxu1 }
 0x227   :  { %v3787_v25 = vadd.f32 %v3786_v24, %v3785_v22  ;;  %v3788_v28 = vpop.f32.mrb[6].mxu1 }
 0x228   :  { %v3789_v30 = vpop.f32.mrb[7].mxu1 }
 0x229   :  { %3868 = vmatpush3.bf16.msra.mxu1 %v4452_v61  ;;  %v3160_v32 = vadd.f32 %v3787_v25, %v3672_v23 }
 0x22a   :  { %3869 = vmatprep.subr.bf16.mxu1 %v4453_v17 }
 0x22d   :  { %3870 = vmatpush3.bf16.msra.mxu1 %v4454_v62 }
 0x22e   :  { %3871 = vmatprep.subr.bf16.mxu1 %v4455_v21 }
 0x231   :  { %3872 = vmatpush3.bf16.msra.mxu1 %v4456_v0 }
 0x232   :  { %3879 = vmatprep.subr.bf16.mxu1 %v4457_v1 }
 0x234   :  { %3318 = vmatmul.mubr.bf16.vlgmr.msra.gmra.mrb[20].mxu1 %v2292_v2 }
 0x235   :  { %3880 = vmatpush3.bf16.msra.mxu1 %v4458_v3 }
 0x236   :  { %3881 = vmatprep.subr.bf16.mxu1 %v4459_v4 }
 0x239   :  { %3882 = vmatpush3.bf16.msra.mxu1 %v4460_v5 }
 0x23a   :  { %3883 = vmatprep.subr.bf16.mxu1 %v4461_v6 }
 0x23d   :  { %3884 = vmatpush3.bf16.msra.mxu1 %v4462_v8 }
 0x23e   :  { %3885 = vmatprep.subr.bf16.mxu1 %v4463_v9 }
 0x241   :  { %3886 = vmatpush3.bf16.msra.mxu1 %v4464_v12 }
 0x242   :  { %3887 = vmatprep.subr.bf16.mxu1 %v4465_v13 }
 0x245   :  { %3888 = vmatpush3.bf16.msra.mxu1 %v4466_v14  ;;  %v3807_v33 = vpop.f32.mrb[8].mxu1 }
 0x246   :  { %3889 = vmatprep.subr.bf16.mxu1 %v4467_v15  ;;  %v3808_v35 = vpop.f32.mrb[9].mxu1 }
 0x247   :  { %v3809_v10 = vadd.f32 %v3808_v35, %v3807_v33  ;;  %v3810_v36 = vpop.f32.mrb[10].mxu1 }
 0x248   :  { %v3811_v37 = vpop.f32.mrb[11].mxu1 }
 0x249   :  { %3890 = vmatpush3.bf16.msra.mxu1 %v4468_v38  ;;  %v3200_v39 = vadd.f32 %v3809_v10, %v3160_v32 }
 0x24a   :  { %3891 = vmatprep.subr.bf16.mxu1 %v4469_v16 }
 0x24d   :  { %3892 = vmatpush3.bf16.msra.mxu1 %v4470_v18 }
 0x24e   :  { %3893 = vmatprep.subr.bf16.mxu1 %v4471_v19 }
 0x251   :  { %3894 = vmatpush3.bf16.msra.mxu1 %v4472_v20 }
 0x265   :  { %v3829_v27 = vpop.f32.mrb[12].mxu1 }
 0x266   :  { %v3830_v40 = vpop.f32.mrb[13].mxu1 }
 0x267   :  { %v3831_v41 = vadd.f32 %v3830_v40, %v3829_v27  ;;  %v3832_v42 = vpop.f32.mrb[14].mxu1 }
 0x268   :  { %v3833_v34 = vpop.f32.mrb[15].mxu1 }
 0x269   :  { %v3240_v43 = vadd.f32 %v3831_v41, %v3200_v39 }
 0x2c2   :  { %v2276_v48 = vpop.f32.mrb[4].mxu0 }
 0x2c3   :  { %v3905_v49 = vadd.f32 %v2276_v48, %v409_v47  ;;  %v2278_v50 = vpop.f32.mrb[5].mxu0 }
 0x2c4   :  { %v3906_v51 = vadd.f32 %v2278_v50, %v413_v46  ;;  %v2280_v52 = vpop.f32.mrb[6].mxu0 }
 0x2c5   :  { %4481 = vtanh.f32 %v3905_v49  ;;  %v2281_v31 = vpop.f32.mrb[7].mxu0 }
 0x2c6   :  { %4483 = vtanh.f32 %v3906_v51 }
 0x2cf   :  { %v4482_v53 = vpop.eup %4481 }
 0x2d0   :  { %v4484_v54 = vpop.eup %4483  ;;  %v2294_v7 = vpack.c.bf16 %v4482_v53, %v4482_v53 }
 0x2d1   :  { %v2295_v55 = vpack.c.bf16 %v4484_v54, %v4484_v54 }
 0x2d3   :  { %3357 = vmatprep.mubr.bf16.mxu1 %v2295_v55 }
 0x2d4   :  { %3358 = vmatmul.mubr.bf16.vlgmr.msra.gmra.mrb[24].mxu1 %v2294_v7 }
 0x2e7   :  { %v3851_v56 = vpop.f32.mrb[16].mxu1 }
 0x2e8   :  { %v3852_v29 = vpop.f32.mrb[17].mxu1 }
 0x2e9   :  { %v3853_v57 = vadd.f32 %v3852_v29, %v3851_v56  ;;  %v3854_v11 = vpop.f32.mrb[18].mxu1 }
 0x2ea   :  { %v3855_v58 = vpop.f32.mrb[19].mxu1 }
 0x2eb   :  { %v3280_v26 = vadd.f32 %v3853_v57, %v3240_v43 }
 0x307   :  { %v3873_v59 = vpop.f32.mrb[20].mxu1 }
 0x308   :  { %v3874_v60 = vpop.f32.mrb[21].mxu1 }
 0x309   :  { %v3875_v61 = vadd.f32 %v3874_v60, %v3873_v59  ;;  %v3876_v17 = vpop.f32.mrb[22].mxu1 }
 0x30a   :  { %v3877_v62 = vpop.f32.mrb[23].mxu1 }
 0x30b   :  { %v3320_v21 = vadd.f32 %v3875_v61, %v3280_v26 }
 0x3a7   :  { %v3895_v63 = vpop.f32.mrb[24].mxu1 }
 0x3a8   :  { %v3896_v0 = vpop.f32.mrb[25].mxu1 }
 0x3a9   :  { %v3897_v1 = vadd.f32 %v3896_v0, %v3895_v63  ;;  %v3898_v2 = vpop.f32.mrb[26].mxu1 }
 0x3aa   :  { %v3899_v3 = vpop.f32.mrb[27].mxu1 }
 0x3ab   :  { %v3360_v4 = vadd.f32 %v3897_v1, %v3320_v21 }
 0x3ad   :  { %3365 = vst [vmem:[#allocation13] sm:$0x3] %v3360_v4 }
 0x3ae   :  { %4628 = shalt.err (!%p4625_p10)
}
 0x3af   :  { %s4629_s21 = scalar_lea.hbm %s4893_s6, 32 }
 0x3b0   :  { %p4630_p11 = scmp.ne.s32.totalorder %s4893_s6, %s4629_s21  ;;  %p4633_p12 = scmp.lt.u32.totalorder %s4629_s21, %s4893_s6 }
 0x3b2   :  { %p4635_p13 = pnand %p4633_p12, %p4630_p11 }
 0x3b4   :  { %4638 = shalt.err (!%p4635_p13)
}
 0x3b5   :  { %3375 = dma.vmem_to_hbm [thread:$0]  %s3373_s18, 32, %s4893_s6, [#allocation4]  }
 0x3b6   :  { %4647 = dma.done.wait [#allocation4], 32  }
 0x3b7   :  { %4648 = vsyncadd [#allocation4], 4294967264 }
 0x3b8   :  { %3379 = vsyncpa [#allocation3], 1 }
 0x3b9   :  { %3380 = vsyncpa [#allocation6], 1 }
 0x3ba   :  { %3381 = vsyncpa [#allocation9], 1 }
 0x3bb   :  { %3382 = vsyncpa [#allocation12], 1 }
 0x3bc   :  { %3383 = vsyncpa [#allocation4], 1 }

</bundles_post_ra>
